<compile_context>
chip_gen: v6e
topology: v6e:2x2x1
jax: 0.10.0
libtpu: 0.0.40
codegen_flags: <defaults>
</compile_context>

<pallas_src>
import math
import jax
import jax.numpy as jnp
from jax import lax
from jax.experimental import pallas as pl
from jax.experimental.pallas import tpu as pltpu

EPS = 1e-6

_C_LAST_FIRST = (((1,), (0,)), ((), ()))   # (M,K) x (K,N)
_C_LAST_LAST = (((1,), (1,)), ((), ()))    # (M,K) x (N,K) -> no K transpose


def _attn_sublayer(x_res, q_src, k_bf, v_bf, wq, bq, wo, bo, inv_sqrt_d, d):
    """out = x_res + LayerNorm(attn(q_src, KV)) with pre-projected bf16 K/V.

    x_res, q_src : (TQ, D) f32      k_bf, v_bf : (Skv, D) bf16 (cached)
    wq, wo : (D, D) bf16            bq, bo : (D,) f32
    """
    q = lax.dot_general(q_src.astype(jnp.bfloat16), wq, _C_LAST_FIRST,
                        preferred_element_type=jnp.float32) + bq
    q = q * inv_sqrt_d                       # fold scale into q (S*D muls)

    # scores: contract last dims directly -> no K transpose / XLU relayout
    scores = lax.dot_general(q.astype(jnp.bfloat16), k_bf, _C_LAST_LAST,
                             preferred_element_type=jnp.float32)   # (TQ, Skv)

    m = jnp.max(scores, axis=-1, keepdims=True)
    p = jnp.exp(scores - m)
    p = p * pl.reciprocal(jnp.sum(p, axis=-1, keepdims=True), approx=True)

    ctx = lax.dot_general(p.astype(jnp.bfloat16), v_bf, _C_LAST_FIRST,
                          preferred_element_type=jnp.float32)       # (TQ, D)

    attn_out = lax.dot_general(ctx.astype(jnp.bfloat16), wo, _C_LAST_FIRST,
                               preferred_element_type=jnp.float32) + bo

    # parameter-free LayerNorm, unbiased (N-1) std — single-pass statistics:
    # both reductions are independent (run on the 2 XLUs), exact divide.
    s1 = jnp.sum(attn_out, axis=-1, keepdims=True)
    s2 = jnp.sum(attn_out * attn_out, axis=-1, keepdims=True)
    mean = s1 * (1.0 / d)
    var = jnp.maximum(s2 - s1 * mean, 0.0) * (1.0 / (d - 1))
    std = jnp.sqrt(var)
    normed = (attn_out - mean) / (std + EPS)

    return x_res + normed


def _encoder_layer2_kernel(xq_ref, xkv_ref, mem_ref,
                           wq_ref, bq_ref, wk_ref, bk_ref,
                           wv_ref, bv_ref, wo_ref, bo_ref,
                           o_ref,
                           ks_ref, vs_ref, km_ref, vm_ref):
    """Fused EncoderLayer2 forward for one (batch, query-tile) grid point.

    xq_ref : (1, TQ, D) f32   query tile / residual
    xkv_ref: (1, S,  D) bf16  self-attention K/V source (full x of this batch)
    mem_ref: (1, Sm, D) bf16  cross-attention K/V source
    w*_ref : (D, D) bf16      shared attention weights (both clones identical)
    b*_ref : (1, D) f32
    o_ref  : (1, TQ, D) f32
    ks/vs/km/vm_ref : bf16 VMEM scratch caching the projected K/V per batch.
    """
    d = xq_ref.shape[-1]
    inv_sqrt_d = 1.0 / math.sqrt(d)

    wq = wq_ref[...]
    wk = wk_ref[...]
    wv = wv_ref[...]
    wo = wo_ref[...]
    bq = bq_ref[0]
    bk = bk_ref[0]
    bv = bv_ref[0]
    bo = bo_ref[0]

    # K/V projections depend only on the batch -> compute once per batch and
    # reuse across every query tile (query-tile axis is "arbitrary").
    @pl.when(pl.program_id(1) == 0)
    def _():
        x_kv = xkv_ref[0]                      # (S, D)  bf16
        mem = mem_ref[0]                       # (Sm, D) bf16
        ks_ref[...] = (lax.dot_general(x_kv, wk, _C_LAST_FIRST,
                                       preferred_element_type=jnp.float32)
                       + bk).astype(jnp.bfloat16)
        vs_ref[...] = (lax.dot_general(x_kv, wv, _C_LAST_FIRST,
                                       preferred_element_type=jnp.float32)
                       + bv).astype(jnp.bfloat16)
        km_ref[...] = (lax.dot_general(mem, wk, _C_LAST_FIRST,
                                       preferred_element_type=jnp.float32)
                       + bk).astype(jnp.bfloat16)
        vm_ref[...] = (lax.dot_general(mem, wv, _C_LAST_FIRST,
                                       preferred_element_type=jnp.float32)
                       + bv).astype(jnp.bfloat16)

    xq = xq_ref[0]                             # (TQ, D) f32

    # sublayer[0]: self-attention (queries from the tile, K/V cached from x)
    h = _attn_sublayer(xq, xq, ks_ref[...], vs_ref[...],
                       wq, bq, wo, bo, inv_sqrt_d, d)
    # sublayer[1]: cross-attention on memory (rows independent -> exact fusion)
    out = _attn_sublayer(h, h, km_ref[...], vm_ref[...],
                         wq, bq, wo, bo, inv_sqrt_d, d)

    o_ref[0] = out


def _default_tile_q():
    """256 for v6e/v7x (2x256^2 MXU), 128 for v5e (4x128^2)."""
    try:
        kind = jax.devices()[0].device_kind.lower()
    except Exception:
        kind = ""
    if "v5 lite" in kind or "v5e" in kind or "v5litepod" in kind:
        return 128
    return 256


def _vmem_limit_bytes(S, Sm, D, tq):
    """Derive scoped-VMEM limit from actual block sizes, capped by chip VMEM."""
    need = (
        2 * tq * D * 4            # query tile, f32, double-buffered
        + 2 * S * D * 2           # x-as-KV, bf16, double-buffered
        + 2 * Sm * D * 2          # memory, bf16, double-buffered
        + 4 * D * D * 2           # weights, bf16 (single-buffered)
        + 8 * D * 4               # biases
        + 2 * tq * D * 4          # output tile, f32, double-buffered
        + 2 * (S + Sm) * D * 2    # cached K/V projections (bf16 scratch)
        + 2 * tq * max(S, Sm) * 4 # score matrix + softmax temporaries
        + 8 * tq * D * 4          # misc f32 intermediates headroom
    )
    try:
        cap = pltpu.get_tpu_info().vmem_capacity_bytes
    except Exception:
        cap = 64 * 1024 * 1024
    limit = int(need * 1.5) + (8 << 20)
    return max(32 << 20, min(limit, int(cap * 3 // 4)))


def encoder_layer2_forward(x, memory, params, *, tile_q=None):
    """EncoderLayer2.forward.  x: (B,S,D) f32, memory: (B,Sm,D) f32."""
    B, S, D = x.shape
    Sm = memory.shape[1]
    wq, bq, wk, bk, wv, bv, wo, bo = params

    # bf16 copies made once in the wrapper: MXU-native operands, half the DMA.
    wq_bf, wk_bf, wv_bf, wo_bf = (w.astype(jnp.bfloat16)
                                  for w in (wq, wk, wv, wo))
    x_kv_bf = x.astype(jnp.bfloat16)
    mem_bf = memory.astype(jnp.bfloat16)

    if tile_q is None:
        tile_q = _default_tile_q()
    tq = min(tile_q, S)
    assert S % tq == 0, "query tile must divide S"
    grid = (B, S // tq)
    vmem_limit = _vmem_limit_bytes(S, Sm, D, tq)

    def build(single_buffer_weights):
        wkw = ({"pipeline_mode": pl.Buffered(1)}
               if single_buffer_weights else {})
        mat_spec = pl.BlockSpec((D, D), lambda b, qi: (0, 0), **wkw)
        vec_spec = pl.BlockSpec((1, D), lambda b, qi: (0, 0), **wkw)
        grid_spec = pltpu.PrefetchScalarGridSpec(
            num_scalar_prefetch=0,
            grid=grid,
            in_specs=[
                pl.BlockSpec((1, tq, D), lambda b, qi: (b, qi, 0)),  # x q-tile
                pl.BlockSpec((1, S, D), lambda b, qi: (b, 0, 0)),    # x (KV, bf16)
                pl.BlockSpec((1, Sm, D), lambda b, qi: (b, 0, 0)),   # memory (bf16)
                mat_spec, vec_spec,                                  # Wq, bq
                mat_spec, vec_spec,                                  # Wk, bk
                mat_spec, vec_spec,                                  # Wv, bv
                mat_spec, vec_spec,                                  # Wo, bo
            ],
            out_specs=pl.BlockSpec((1, tq, D), lambda b, qi: (b, qi, 0)),
            scratch_shapes=[
                pltpu.VMEM((S, D), jnp.bfloat16),    # cached K (self)
                pltpu.VMEM((S, D), jnp.bfloat16),    # cached V (self)
                pltpu.VMEM((Sm, D), jnp.bfloat16),   # cached K (memory)
                pltpu.VMEM((Sm, D), jnp.bfloat16),   # cached V (memory)
            ]),
        return pl.pallas_call(
            _encoder_layer2_kernel,
            out_shape=jax.ShapeDtypeStruct((B, S, D), jnp.float32),
            grid_spec=grid_spec[0],
            compiler_params=pltpu.CompilerParams(
                # qi axis carries the per-batch K/V scratch cache -> arbitrary
                dimension_semantics=("parallel", "arbitrary"),
                vmem_limit_bytes=vmem_limit),
        )

    args = (x, x_kv_bf, mem_bf, wq_bf, bq, wk_bf, bk, wv_bf, bv, wo_bf, bo)
    try:
        return build(True)(*args)
    except Exception:
        # pl.Buffered(1) on the grid-invariant weight specs is a pure VMEM
        # saving; fall back to default buffering if this build rejects it.
        return build(False)(*args)


def _reference_forward(x, memory, params):
    """Plain-JAX f32 reference mirroring the PyTorch semantics."""
    wq, bq, wk, bk, wv, bv, wo, bo = params
    d = x.shape[-1]

    def attn(q_in, kv_in):
        q = q_in @ wq + bq[0]
        k = kv_in @ wk + bk[0]
        v = kv_in @ wv + bv[0]
        scores = jnp.einsum("bqd,bkd->bqk", q, k) / math.sqrt(d)
        p = jax.nn.softmax(scores, axis=-1)
        ctx = jnp.einsum("bqk,bkd->bqd", p, v)
        return ctx @ wo + bo[0]

    def layer_norm(t):
        mean = jnp.mean(t, axis=-1, keepdims=True)
        c = t - mean
        std = jnp.sqrt(jnp.sum(c * c, axis=-1, keepdims=True) / (d - 1))
        return c / (std + EPS)

    x = x + layer_norm(attn(x, x))
    x = x + layer_norm(attn(x, memory))
    return x


def make_params(key, d):
    """Deterministic single-head attention parameters (shared by both clones)."""
    ks = jax.random.split(key, 8)
    scale = 1.0 / math.sqrt(d)
    wq = jax.random.uniform(ks[0], (d, d), jnp.float32, -scale, scale)
    bq = jax.random.uniform(ks[1], (1, d), jnp.float32, -scale, scale)
    wk = jax.random.uniform(ks[2], (d, d), jnp.float32, -scale, scale)
    bk = jax.random.uniform(ks[3], (1, d), jnp.float32, -scale, scale)
    wv = jax.random.uniform(ks[4], (d, d), jnp.float32, -scale, scale)
    bv = jax.random.uniform(ks[5], (1, d), jnp.float32, -scale, scale)
    wo = jax.random.uniform(ks[6], (d, d), jnp.float32, -scale, scale)
    bo = jax.random.uniform(ks[7], (1, d), jnp.float32, -scale, scale)
    return (wq, bq, wk, bk, wv, bv, wo, bo)


if __name__ == "__main__":
    B, S, SM, D = 2, 8, 8, 32
    key = jax.random.PRNGKey(0)
    kx, km, kp = jax.random.split(key, 3)

    x = jax.random.normal(kx, (B, S, D), dtype=jnp.float32)
    memory = jax.random.normal(km, (B, SM, D), dtype=jnp.float32)
    params = make_params(kp, D)

    out = encoder_layer2_forward(x, memory, params)
    out = jax.block_until_ready(out)

    ref = _reference_forward(x, memory, params)
    assert out.shape == (B, S, D)

    # bf16 MXU operands + approx softmax reciprocal -> bf16-level tolerance.
    max_abs_err = float(jnp.max(jnp.abs(out - ref)))
    rel_err = float(jnp.linalg.norm(out - ref) / jnp.linalg.norm(ref))
    assert rel_err < 5e-2 and max_abs_err < 2e-1, (
        f"mismatch vs reference: rel={rel_err}, max_abs={max_abs_err}")

    print("KERNEL_OK")
</pallas_src>

<mosaic_0001>
module attributes {stable_mosaic.version = 11 : i64} {
  func.func @_encoder_layer2_kernel(%arg0: i32, %arg1: i32, %arg2: memref<1x8x32xf32, #tpu.memory_space<vmem>>, %arg3: memref<1x8x32xbf16, #tpu.memory_space<vmem>>, %arg4: memref<1x8x32xbf16, #tpu.memory_space<vmem>>, %arg5: memref<32x32xbf16, #tpu.memory_space<vmem>>, %arg6: memref<1x32xf32, #tpu.memory_space<vmem>>, %arg7: memref<32x32xbf16, #tpu.memory_space<vmem>>, %arg8: memref<1x32xf32, #tpu.memory_space<vmem>>, %arg9: memref<32x32xbf16, #tpu.memory_space<vmem>>, %arg10: memref<1x32xf32, #tpu.memory_space<vmem>>, %arg11: memref<32x32xbf16, #tpu.memory_space<vmem>>, %arg12: memref<1x32xf32, #tpu.memory_space<vmem>>, %arg13: memref<1x8x32xf32, #tpu.memory_space<vmem>>, %arg14: memref<8x32xbf16, #tpu.memory_space<vmem>>, %arg15: memref<8x32xbf16, #tpu.memory_space<vmem>>, %arg16: memref<8x32xbf16, #tpu.memory_space<vmem>>, %arg17: memref<8x32xbf16, #tpu.memory_space<vmem>>) attributes {dimension_semantics = [#tpu.dimension_semantics<parallel>, #tpu.dimension_semantics<arbitrary>], iteration_bounds = array<i64: 2, 1>, scalar_prefetch = 0 : i64, scratch_operands = 4 : i64, tpu.core_type = #tpu.core_type<tc>, window_params = [{transform_indices = @transform_0, window_bounds = array<i64: 1, 8, 32>}, {transform_indices = @transform_1, window_bounds = array<i64: 1, 8, 32>}, {transform_indices = @transform_2, window_bounds = array<i64: 1, 8, 32>}, {pipeline_mode = #tpu.pipeline_mode<synchronous>, transform_indices = @transform_3, window_bounds = array<i64: 32, 32>}, {pipeline_mode = #tpu.pipeline_mode<synchronous>, transform_indices = @transform_4, window_bounds = array<i64: 1, 32>}, {pipeline_mode = #tpu.pipeline_mode<synchronous>, transform_indices = @transform_5, window_bounds = array<i64: 32, 32>}, {pipeline_mode = #tpu.pipeline_mode<synchronous>, transform_indices = @transform_6, window_bounds = array<i64: 1, 32>}, {pipeline_mode = #tpu.pipeline_mode<synchronous>, transform_indices = @transform_7, window_bounds = array<i64: 32, 32>}, {pipeline_mode = #tpu.pipeline_mode<synchronous>, transform_indices = @transform_8, window_bounds = array<i64: 1, 32>}, {pipeline_mode = #tpu.pipeline_mode<synchronous>, transform_indices = @transform_9, window_bounds = array<i64: 32, 32>}, {pipeline_mode = #tpu.pipeline_mode<synchronous>, transform_indices = @transform_10, window_bounds = array<i64: 1, 32>}, {transform_indices = @transform_11, window_bounds = array<i64: 1, 8, 32>}]} {
    %c0 = arith.constant 0 : index
    %c0_0 = arith.constant 0 : index
    %0 = vector.load %arg5[%c0, %c0_0] : memref<32x32xbf16, #tpu.memory_space<vmem>>, vector<32x32xbf16>
    %c0_1 = arith.constant 0 : index
    %c0_2 = arith.constant 0 : index
    %1 = vector.load %arg7[%c0_1, %c0_2] : memref<32x32xbf16, #tpu.memory_space<vmem>>, vector<32x32xbf16>
    %c0_3 = arith.constant 0 : index
    %c0_4 = arith.constant 0 : index
    %2 = vector.load %arg9[%c0_3, %c0_4] : memref<32x32xbf16, #tpu.memory_space<vmem>>, vector<32x32xbf16>
    %c0_5 = arith.constant 0 : index
    %c0_6 = arith.constant 0 : index
    %3 = vector.load %arg11[%c0_5, %c0_6] : memref<32x32xbf16, #tpu.memory_space<vmem>>, vector<32x32xbf16>
    %c0_7 = arith.constant 0 : index
    %c0_8 = arith.constant 0 : index
    %4 = vector.load %arg6[%c0_7, %c0_8] : memref<1x32xf32, #tpu.memory_space<vmem>>, vector<1x32xf32>
    %5 = vector.shape_cast %4 : vector<1x32xf32> to vector<32xf32>
    %c0_9 = arith.constant 0 : index
    %c0_10 = arith.constant 0 : index
    %6 = vector.load %arg8[%c0_9, %c0_10] : memref<1x32xf32, #tpu.memory_space<vmem>>, vector<1x32xf32>
    %7 = vector.shape_cast %6 : vector<1x32xf32> to vector<32xf32>
    %c0_11 = arith.constant 0 : index
    %c0_12 = arith.constant 0 : index
    %8 = vector.load %arg10[%c0_11, %c0_12] : memref<1x32xf32, #tpu.memory_space<vmem>>, vector<1x32xf32>
    %9 = vector.shape_cast %8 : vector<1x32xf32> to vector<32xf32>
    %c0_13 = arith.constant 0 : index
    %c0_14 = arith.constant 0 : index
    %10 = vector.load %arg12[%c0_13, %c0_14] : memref<1x32xf32, #tpu.memory_space<vmem>>, vector<1x32xf32>
    %11 = vector.shape_cast %10 : vector<1x32xf32> to vector<32xf32>
    %c0_i32 = arith.constant 0 : i32
    %12 = arith.cmpi eq, %arg1, %c0_i32 : i32
    %13 = arith.extui %12 : i1 to i32
    %c0_i32_15 = arith.constant 0 : i32
    %14 = arith.cmpi ne, %13, %c0_i32_15 : i32
    scf.if %14 {
      %c0_55 = arith.constant 0 : index
      %c0_56 = arith.constant 0 : index
      %c0_57 = arith.constant 0 : index
      %118 = vector.load %arg3[%c0_55, %c0_56, %c0_57] : memref<1x8x32xbf16, #tpu.memory_space<vmem>>, vector<1x8x32xbf16>
      %119 = vector.shape_cast %118 : vector<1x8x32xbf16> to vector<8x32xbf16>
      %c0_58 = arith.constant 0 : index
      %c0_59 = arith.constant 0 : index
      %c0_60 = arith.constant 0 : index
      %120 = vector.load %arg4[%c0_58, %c0_59, %c0_60] : memref<1x8x32xbf16, #tpu.memory_space<vmem>>, vector<1x8x32xbf16>
      %121 = vector.shape_cast %120 : vector<1x8x32xbf16> to vector<8x32xbf16>
      %cst_61 = arith.constant dense<0.000000e+00> : vector<8x32xf32>
      %122 = tpu.matmul %119, %1, %cst_61 {dimension_numbers = #tpu.dot_dimension_numbers<[1], [0], [0], [1], [0, 0, 1, 1], [], []>} : vector<8x32xbf16>, vector<32x32xbf16>, vector<8x32xf32> -> vector<8x32xf32>
      %123 = vector.shape_cast %7 : vector<32xf32> to vector<1x32xf32>
      %124 = vector.broadcast %123 : vector<1x32xf32> to vector<8x32xf32>
      %125 = arith.addf %122, %124 : vector<8x32xf32>
      %126 = arith.truncf %125 : vector<8x32xf32> to vector<8x32xbf16>
      %c0_62 = arith.constant 0 : index
      %c0_63 = arith.constant 0 : index
      %127 = vector.load %arg14[%c0_62, %c0_63] : memref<8x32xbf16, #tpu.memory_space<vmem>>, vector<8x32xbf16>
      tpu.vector_store %arg14[%c0_62, %c0_63], %126 {strides = array<i32>} : memref<8x32xbf16, #tpu.memory_space<vmem>>, vector<8x32xbf16>,
      %cst_64 = arith.constant dense<0.000000e+00> : vector<8x32xf32>
      %128 = tpu.matmul %119, %2, %cst_64 {dimension_numbers = #tpu.dot_dimension_numbers<[1], [0], [0], [1], [0, 0, 1, 1], [], []>} : vector<8x32xbf16>, vector<32x32xbf16>, vector<8x32xf32> -> vector<8x32xf32>
      %129 = vector.shape_cast %9 : vector<32xf32> to vector<1x32xf32>
      %130 = vector.broadcast %129 : vector<1x32xf32> to vector<8x32xf32>
      %131 = arith.addf %128, %130 : vector<8x32xf32>
      %132 = arith.truncf %131 : vector<8x32xf32> to vector<8x32xbf16>
      %c0_65 = arith.constant 0 : index
      %c0_66 = arith.constant 0 : index
      %133 = vector.load %arg15[%c0_65, %c0_66] : memref<8x32xbf16, #tpu.memory_space<vmem>>, vector<8x32xbf16>
      tpu.vector_store %arg15[%c0_65, %c0_66], %132 {strides = array<i32>} : memref<8x32xbf16, #tpu.memory_space<vmem>>, vector<8x32xbf16>,
      %cst_67 = arith.constant dense<0.000000e+00> : vector<8x32xf32>
      %134 = tpu.matmul %121, %1, %cst_67 {dimension_numbers = #tpu.dot_dimension_numbers<[1], [0], [0], [1], [0, 0, 1, 1], [], []>} : vector<8x32xbf16>, vector<32x32xbf16>, vector<8x32xf32> -> vector<8x32xf32>
      %135 = vector.shape_cast %7 : vector<32xf32> to vector<1x32xf32>
      %136 = vector.broadcast %135 : vector<1x32xf32> to vector<8x32xf32>
      %137 = arith.addf %134, %136 : vector<8x32xf32>
      %138 = arith.truncf %137 : vector<8x32xf32> to vector<8x32xbf16>
      %c0_68 = arith.constant 0 : index
      %c0_69 = arith.constant 0 : index
      %139 = vector.load %arg16[%c0_68, %c0_69] : memref<8x32xbf16, #tpu.memory_space<vmem>>, vector<8x32xbf16>
      tpu.vector_store %arg16[%c0_68, %c0_69], %138 {strides = array<i32>} : memref<8x32xbf16, #tpu.memory_space<vmem>>, vector<8x32xbf16>,
      %cst_70 = arith.constant dense<0.000000e+00> : vector<8x32xf32>
      %140 = tpu.matmul %121, %2, %cst_70 {dimension_numbers = #tpu.dot_dimension_numbers<[1], [0], [0], [1], [0, 0, 1, 1], [], []>} : vector<8x32xbf16>, vector<32x32xbf16>, vector<8x32xf32> -> vector<8x32xf32>
      %141 = vector.shape_cast %9 : vector<32xf32> to vector<1x32xf32>
      %142 = vector.broadcast %141 : vector<1x32xf32> to vector<8x32xf32>
      %143 = arith.addf %140, %142 : vector<8x32xf32>
      %144 = arith.truncf %143 : vector<8x32xf32> to vector<8x32xbf16>
      %c0_71 = arith.constant 0 : index
      %c0_72 = arith.constant 0 : index
      %145 = vector.load %arg17[%c0_71, %c0_72] : memref<8x32xbf16, #tpu.memory_space<vmem>>, vector<8x32xbf16>
      tpu.vector_store %arg17[%c0_71, %c0_72], %144 {strides = array<i32>} : memref<8x32xbf16, #tpu.memory_space<vmem>>, vector<8x32xbf16>,
    } else {
    }
    %c0_16 = arith.constant 0 : index
    %c0_17 = arith.constant 0 : index
    %c0_18 = arith.constant 0 : index
    %15 = vector.load %arg2[%c0_16, %c0_17, %c0_18] : memref<1x8x32xf32, #tpu.memory_space<vmem>>, vector<1x8x32xf32>
    %16 = vector.shape_cast %15 : vector<1x8x32xf32> to vector<8x32xf32>
    %c0_19 = arith.constant 0 : index
    %c0_20 = arith.constant 0 : index
    %17 = vector.load %arg14[%c0_19, %c0_20] : memref<8x32xbf16, #tpu.memory_space<vmem>>, vector<8x32xbf16>
    %c0_21 = arith.constant 0 : index
    %c0_22 = arith.constant 0 : index
    %18 = vector.load %arg15[%c0_21, %c0_22] : memref<8x32xbf16, #tpu.memory_space<vmem>>, vector<8x32xbf16>
    %19 = arith.truncf %16 : vector<8x32xf32> to vector<8x32xbf16>
    %cst = arith.constant dense<0.000000e+00> : vector<8x32xf32>
    %20 = tpu.matmul %19, %0, %cst {dimension_numbers = #tpu.dot_dimension_numbers<[1], [0], [0], [1], [0, 0, 1, 1], [], []>} : vector<8x32xbf16>, vector<32x32xbf16>, vector<8x32xf32> -> vector<8x32xf32>
    %21 = vector.shape_cast %5 : vector<32xf32> to vector<1x32xf32>
    %22 = vector.broadcast %21 : vector<1x32xf32> to vector<8x32xf32>
    %23 = arith.addf %20, %22 : vector<8x32xf32>
    %cst_23 = arith.constant 0.176776692 : f32
    %24 = vector.broadcast %cst_23 : f32 to vector<8x32xf32>
    %25 = arith.mulf %23, %24 : vector<8x32xf32>
    %26 = arith.truncf %25 : vector<8x32xf32> to vector<8x32xbf16>
    %cst_24 = arith.constant dense<0.000000e+00> : vector<8x8xf32>
    %27 = tpu.matmul %26, %17, %cst_24 {dimension_numbers = #tpu.dot_dimension_numbers<[1], [1], [0], [0], [0, 0, 1, 0], [], []>} : vector<8x32xbf16>, vector<8x32xbf16>, vector<8x8xf32> -> vector<8x8xf32>
    %cst_25 = arith.constant dense<0xFF800000> : vector<8xf32>
    %28 = vector.multi_reduction <maximumf>, %27, %cst_25 [1] : vector<8x8xf32> to vector<8xf32>
    %29 = vector.shape_cast %28 : vector<8xf32> to vector<8x1xf32>
    %30 = vector.broadcast %29 : vector<8x1xf32> to vector<8x8xf32>
    %31 = arith.subf %27, %30 : vector<8x8xf32>
    %32 = math.exp %31 : vector<8x8xf32>
    %cst_26 = arith.constant dense<0.000000e+00> : vector<8xf32>
    %33 = vector.multi_reduction <add>, %32, %cst_26 [1] : vector<8x8xf32> to vector<8xf32>
    %34 = vector.shape_cast %33 : vector<8xf32> to vector<8x1xf32>
    %35 = tpu.reciprocal %34 {approx = true} : vector<8x1xf32> -> vector<8x1xf32>
    %36 = vector.broadcast %35 : vector<8x1xf32> to vector<8x8xf32>
    %37 = arith.mulf %32, %36 : vector<8x8xf32>
    %38 = arith.truncf %37 : vector<8x8xf32> to vector<8x8xbf16>
    %cst_27 = arith.constant dense<0.000000e+00> : vector<8x32xf32>
    %39 = tpu.matmul %38, %18, %cst_27 {dimension_numbers = #tpu.dot_dimension_numbers<[1], [0], [0], [1], [0, 0, 1, 1], [], []>} : vector<8x8xbf16>, vector<8x32xbf16>, vector<8x32xf32> -> vector<8x32xf32>
    %40 = arith.truncf %39 : vector<8x32xf32> to vector<8x32xbf16>
    %cst_28 = arith.constant dense<0.000000e+00> : vector<8x32xf32>
    %41 = tpu.matmul %40, %3, %cst_28 {dimension_numbers = #tpu.dot_dimension_numbers<[1], [0], [0], [1], [0, 0, 1, 1], [], []>} : vector<8x32xbf16>, vector<32x32xbf16>, vector<8x32xf32> -> vector<8x32xf32>
    %42 = vector.shape_cast %11 : vector<32xf32> to vector<1x32xf32>
    %43 = vector.broadcast %42 : vector<1x32xf32> to vector<8x32xf32>
    %44 = arith.addf %41, %43 : vector<8x32xf32>
    %cst_29 = arith.constant dense<0.000000e+00> : vector<8xf32>
    %45 = vector.multi_reduction <add>, %44, %cst_29 [1] : vector<8x32xf32> to vector<8xf32>
    %46 = vector.shape_cast %45 : vector<8xf32> to vector<8x1xf32>
    %47 = arith.mulf %44, %44 : vector<8x32xf32>
    %cst_30 = arith.constant dense<0.000000e+00> : vector<8xf32>
    %48 = vector.multi_reduction <add>, %47, %cst_30 [1] : vector<8x32xf32> to vector<8xf32>
    %49 = vector.shape_cast %48 : vector<8xf32> to vector<8x1xf32>
    %cst_31 = arith.constant 3.125000e-02 : f32
    %50 = vector.broadcast %cst_31 : f32 to vector<8x1xf32>
    %51 = arith.mulf %46, %50 : vector<8x1xf32>
    %52 = arith.mulf %46, %51 : vector<8x1xf32>
    %53 = arith.subf %49, %52 : vector<8x1xf32>
    %cst_32 = arith.constant 0.000000e+00 : f32
    %54 = vector.broadcast %cst_32 : f32 to vector<8x1xf32>
    %55 = arith.maximumf %53, %54 : vector<8x1xf32>
    %cst_33 = arith.constant 0.0322580636 : f32
    %56 = vector.broadcast %cst_33 : f32 to vector<8x1xf32>
    %57 = arith.mulf %55, %56 : vector<8x1xf32>
    %58 = math.sqrt %57 : vector<8x1xf32>
    %59 = vector.broadcast %51 : vector<8x1xf32> to vector<8x32xf32>
    %60 = arith.subf %44, %59 : vector<8x32xf32>
    %cst_34 = arith.constant 9.99999997E-7 : f32
    %61 = vector.broadcast %cst_34 : f32 to vector<8x1xf32>
    %62 = arith.addf %58, %61 : vector<8x1xf32>
    %63 = vector.broadcast %62 : vector<8x1xf32> to vector<8x32xf32>
    %64 = arith.divf %60, %63 : vector<8x32xf32>
    %65 = arith.addf %16, %64 : vector<8x32xf32>
    %c0_35 = arith.constant 0 : index
    %c0_36 = arith.constant 0 : index
    %66 = vector.load %arg16[%c0_35, %c0_36] : memref<8x32xbf16, #tpu.memory_space<vmem>>, vector<8x32xbf16>
    %c0_37 = arith.constant 0 : index
    %c0_38 = arith.constant 0 : index
    %67 = vector.load %arg17[%c0_37, %c0_38] : memref<8x32xbf16, #tpu.memory_space<vmem>>, vector<8x32xbf16>
    %68 = arith.truncf %65 : vector<8x32xf32> to vector<8x32xbf16>
    %cst_39 = arith.constant dense<0.000000e+00> : vector<8x32xf32>
    %69 = tpu.matmul %68, %0, %cst_39 {dimension_numbers = #tpu.dot_dimension_numbers<[1], [0], [0], [1], [0, 0, 1, 1], [], []>} : vector<8x32xbf16>, vector<32x32xbf16>, vector<8x32xf32> -> vector<8x32xf32>
    %70 = vector.shape_cast %5 : vector<32xf32> to vector<1x32xf32>
    %71 = vector.broadcast %70 : vector<1x32xf32> to vector<8x32xf32>
    %72 = arith.addf %69, %71 : vector<8x32xf32>
    %cst_40 = arith.constant 0.176776692 : f32
    %73 = vector.broadcast %cst_40 : f32 to vector<8x32xf32>
    %74 = arith.mulf %72, %73 : vector<8x32xf32>
    %75 = arith.truncf %74 : vector<8x32xf32> to vector<8x32xbf16>
    %cst_41 = arith.constant dense<0.000000e+00> : vector<8x8xf32>
    %76 = tpu.matmul %75, %66, %cst_41 {dimension_numbers = #tpu.dot_dimension_numbers<[1], [1], [0], [0], [0, 0, 1, 0], [], []>} : vector<8x32xbf16>, vector<8x32xbf16>, vector<8x8xf32> -> vector<8x8xf32>
    %cst_42 = arith.constant dense<0xFF800000> : vector<8xf32>
    %77 = vector.multi_reduction <maximumf>, %76, %cst_42 [1] : vector<8x8xf32> to vector<8xf32>
    %78 = vector.shape_cast %77 : vector<8xf32> to vector<8x1xf32>
    %79 = vector.broadcast %78 : vector<8x1xf32> to vector<8x8xf32>
    %80 = arith.subf %76, %79 : vector<8x8xf32>
    %81 = math.exp %80 : vector<8x8xf32>
    %cst_43 = arith.constant dense<0.000000e+00> : vector<8xf32>
    %82 = vector.multi_reduction <add>, %81, %cst_43 [1] : vector<8x8xf32> to vector<8xf32>
    %83 = vector.shape_cast %82 : vector<8xf32> to vector<8x1xf32>
    %84 = tpu.reciprocal %83 {approx = true} : vector<8x1xf32> -> vector<8x1xf32>
    %85 = vector.broadcast %84 : vector<8x1xf32> to vector<8x8xf32>
    %86 = arith.mulf %81, %85 : vector<8x8xf32>
    %87 = arith.truncf %86 : vector<8x8xf32> to vector<8x8xbf16>
    %cst_44 = arith.constant dense<0.000000e+00> : vector<8x32xf32>
    %88 = tpu.matmul %87, %67, %cst_44 {dimension_numbers = #tpu.dot_dimension_numbers<[1], [0], [0], [1], [0, 0, 1, 1], [], []>} : vector<8x8xbf16>, vector<8x32xbf16>, vector<8x32xf32> -> vector<8x32xf32>
    %89 = arith.truncf %88 : vector<8x32xf32> to vector<8x32xbf16>
    %cst_45 = arith.constant dense<0.000000e+00> : vector<8x32xf32>
    %90 = tpu.matmul %89, %3, %cst_45 {dimension_numbers = #tpu.dot_dimension_numbers<[1], [0], [0], [1], [0, 0, 1, 1], [], []>} : vector<8x32xbf16>, vector<32x32xbf16>, vector<8x32xf32> -> vector<8x32xf32>
    %91 = vector.shape_cast %11 : vector<32xf32> to vector<1x32xf32>
    %92 = vector.broadcast %91 : vector<1x32xf32> to vector<8x32xf32>
    %93 = arith.addf %90, %92 : vector<8x32xf32>
    %cst_46 = arith.constant dense<0.000000e+00> : vector<8xf32>
    %94 = vector.multi_reduction <add>, %93, %cst_46 [1] : vector<8x32xf32> to vector<8xf32>
    %95 = vector.shape_cast %94 : vector<8xf32> to vector<8x1xf32>
    %96 = arith.mulf %93, %93 : vector<8x32xf32>
    %cst_47 = arith.constant dense<0.000000e+00> : vector<8xf32>
    %97 = vector.multi_reduction <add>, %96, %cst_47 [1] : vector<8x32xf32> to vector<8xf32>
    %98 = vector.shape_cast %97 : vector<8xf32> to vector<8x1xf32>
    %cst_48 = arith.constant 3.125000e-02 : f32
    %99 = vector.broadcast %cst_48 : f32 to vector<8x1xf32>
    %100 = arith.mulf %95, %99 : vector<8x1xf32>
    %101 = arith.mulf %95, %100 : vector<8x1xf32>
    %102 = arith.subf %98, %101 : vector<8x1xf32>
    %cst_49 = arith.constant 0.000000e+00 : f32
    %103 = vector.broadcast %cst_49 : f32 to vector<8x1xf32>
    %104 = arith.maximumf %102, %103 : vector<8x1xf32>
    %cst_50 = arith.constant 0.0322580636 : f32
    %105 = vector.broadcast %cst_50 : f32 to vector<8x1xf32>
    %106 = arith.mulf %104, %105 : vector<8x1xf32>
    %107 = math.sqrt %106 : vector<8x1xf32>
    %108 = vector.broadcast %100 : vector<8x1xf32> to vector<8x32xf32>
    %109 = arith.subf %93, %108 : vector<8x32xf32>
    %cst_51 = arith.constant 9.99999997E-7 : f32
    %110 = vector.broadcast %cst_51 : f32 to vector<8x1xf32>
    %111 = arith.addf %107, %110 : vector<8x1xf32>
    %112 = vector.broadcast %111 : vector<8x1xf32> to vector<8x32xf32>
    %113 = arith.divf %109, %112 : vector<8x32xf32>
    %114 = arith.addf %65, %113 : vector<8x32xf32>
    %c0_52 = arith.constant 0 : index
    %c0_53 = arith.constant 0 : index
    %c0_54 = arith.constant 0 : index
    %115 = vector.load %arg13[%c0_52, %c0_53, %c0_54] : memref<1x8x32xf32, #tpu.memory_space<vmem>>, vector<1x8x32xf32>
    %116 = vector.shape_cast %115 : vector<1x8x32xf32> to vector<8x32xf32>
    %117 = vector.shape_cast %114 : vector<8x32xf32> to vector<1x8x32xf32>
    tpu.vector_store %arg13[%c0_52, %c0_53, %c0_54], %117 {strides = array<i32>} : memref<1x8x32xf32, #tpu.memory_space<vmem>>, vector<1x8x32xf32>,
    return
  }
  func.func @transform_0(%arg0: i32, %arg1: i32) -> (i32, i32, i32) {
    %c0_i32 = arith.constant 0 : i32
    %c0_i32_0 = arith.constant 0 : i32
    return %arg0, %arg1, %c0_i32 : i32, i32, i32
  }
  func.func @transform_1(%arg0: i32, %arg1: i32) -> (i32, i32, i32) {
    %c0_i32 = arith.constant 0 : i32
    %c0_i32_0 = arith.constant 0 : i32
    %c0_i32_1 = arith.constant 0 : i32
    return %arg0, %c0_i32, %c0_i32_0 : i32, i32, i32
  }
  func.func @transform_2(%arg0: i32, %arg1: i32) -> (i32, i32, i32) {
    %c0_i32 = arith.constant 0 : i32
    %c0_i32_0 = arith.constant 0 : i32
    %c0_i32_1 = arith.constant 0 : i32
    return %arg0, %c0_i32, %c0_i32_0 : i32, i32, i32
  }
  func.func @transform_3(%arg0: i32, %arg1: i32) -> (i32, i32) {
    %c0_i32 = arith.constant 0 : i32
    %c0_i32_0 = arith.constant 0 : i32
    %c0_i32_1 = arith.constant 0 : i32
    return %c0_i32, %c0_i32_0 : i32, i32
  }
  func.func @transform_4(%arg0: i32, %arg1: i32) -> (i32, i32) {
    %c0_i32 = arith.constant 0 : i32
    %c0_i32_0 = arith.constant 0 : i32
    %c0_i32_1 = arith.constant 0 : i32
    return %c0_i32, %c0_i32_0 : i32, i32
  }
  func.func @transform_5(%arg0: i32, %arg1: i32) -> (i32, i32) {
    %c0_i32 = arith.constant 0 : i32
    %c0_i32_0 = arith.constant 0 : i32
    %c0_i32_1 = arith.constant 0 : i32
    return %c0_i32, %c0_i32_0 : i32, i32
  }
  func.func @transform_6(%arg0: i32, %arg1: i32) -> (i32, i32) {
    %c0_i32 = arith.constant 0 : i32
    %c0_i32_0 = arith.constant 0 : i32
    %c0_i32_1 = arith.constant 0 : i32
    return %c0_i32, %c0_i32_0 : i32, i32
  }
  func.func @transform_7(%arg0: i32, %arg1: i32) -> (i32, i32) {
    %c0_i32 = arith.constant 0 : i32
    %c0_i32_0 = arith.constant 0 : i32
    %c0_i32_1 = arith.constant 0 : i32
    return %c0_i32, %c0_i32_0 : i32, i32
  }
  func.func @transform_8(%arg0: i32, %arg1: i32) -> (i32, i32) {
    %c0_i32 = arith.constant 0 : i32
    %c0_i32_0 = arith.constant 0 : i32
    %c0_i32_1 = arith.constant 0 : i32
    return %c0_i32, %c0_i32_0 : i32, i32
  }
  func.func @transform_9(%arg0: i32, %arg1: i32) -> (i32, i32) {
    %c0_i32 = arith.constant 0 : i32
    %c0_i32_0 = arith.constant 0 : i32
    %c0_i32_1 = arith.constant 0 : i32
    return %c0_i32, %c0_i32_0 : i32, i32
  }
  func.func @transform_10(%arg0: i32, %arg1: i32) -> (i32, i32) {
    %c0_i32 = arith.constant 0 : i32
    %c0_i32_0 = arith.constant 0 : i32
    %c0_i32_1 = arith.constant 0 : i32
    return %c0_i32, %c0_i32_0 : i32, i32
  }
  func.func @transform_11(%arg0: i32, %arg1: i32) -> (i32, i32, i32) {
    %c0_i32 = arith.constant 0 : i32
    %c0_i32_0 = arith.constant 0 : i32
    return %arg0, %arg1, %c0_i32 : i32, i32, i32
  }
}

module attributes {stable_mosaic.version = 11 : i64} {
  func.func @_encoder_layer2_kernel(%arg0: i32, %arg1: i32, %arg2: memref<1x8x32xf32, #tpu.memory_space<vmem>>, %arg3: memref<1x8x32xbf16, #tpu.memory_space<vmem>>, %arg4: memref<1x8x32xbf16, #tpu.memory_space<vmem>>, %arg5: memref<32x32xbf16, #tpu.memory_space<vmem>>, %arg6: memref<1x32xf32, #tpu.memory_space<vmem>>, %arg7: memref<32x32xbf16, #tpu.memory_space<vmem>>, %arg8: memref<1x32xf32, #tpu.memory_space<vmem>>, %arg9: memref<32x32xbf16, #tpu.memory_space<vmem>>, %arg10: memref<1x32xf32, #tpu.memory_space<vmem>>, %arg11: memref<32x32xbf16, #tpu.memory_space<vmem>>, %arg12: memref<1x32xf32, #tpu.memory_space<vmem>>, %arg13: memref<1x8x32xf32, #tpu.memory_space<vmem>>, %arg14: memref<8x32xbf16, #tpu.memory_space<vmem>>, %arg15: memref<8x32xbf16, #tpu.memory_space<vmem>>, %arg16: memref<8x32xbf16, #tpu.memory_space<vmem>>, %arg17: memref<8x32xbf16, #tpu.memory_space<vmem>>) attributes {dimension_semantics = [#tpu.dimension_semantics<parallel>, #tpu.dimension_semantics<arbitrary>], iteration_bounds = array<i64: 2, 1>, scalar_prefetch = 0 : i64, scratch_operands = 4 : i64, tpu.core_type = #tpu.core_type<tc>, window_params = [{transform_indices = @transform_0, window_bounds = array<i64: 1, 8, 32>}, {transform_indices = @transform_1, window_bounds = array<i64: 1, 8, 32>}, {transform_indices = @transform_2, window_bounds = array<i64: 1, 8, 32>}, {pipeline_mode = #tpu.pipeline_mode<synchronous>, transform_indices = @transform_3, window_bounds = array<i64: 32, 32>}, {pipeline_mode = #tpu.pipeline_mode<synchronous>, transform_indices = @transform_4, window_bounds = array<i64: 1, 32>}, {pipeline_mode = #tpu.pipeline_mode<synchronous>, transform_indices = @transform_5, window_bounds = array<i64: 32, 32>}, {pipeline_mode = #tpu.pipeline_mode<synchronous>, transform_indices = @transform_6, window_bounds = array<i64: 1, 32>}, {pipeline_mode = #tpu.pipeline_mode<synchronous>, transform_indices = @transform_7, window_bounds = array<i64: 32, 32>}, {pipeline_mode = #tpu.pipeline_mode<synchronous>, transform_indices = @transform_8, window_bounds = array<i64: 1, 32>}, {pipeline_mode = #tpu.pipeline_mode<synchronous>, transform_indices = @transform_9, window_bounds = array<i64: 32, 32>}, {pipeline_mode = #tpu.pipeline_mode<synchronous>, transform_indices = @transform_10, window_bounds = array<i64: 1, 32>}, {transform_indices = @transform_11, window_bounds = array<i64: 1, 8, 32>}]} {
    %c0 = arith.constant 0 : index
    %c0_0 = arith.constant 0 : index
    %0 = vector.load %arg5[%c0, %c0_0] : memref<32x32xbf16, #tpu.memory_space<vmem>>, vector<32x32xbf16>
    %c0_1 = arith.constant 0 : index
    %c0_2 = arith.constant 0 : index
    %1 = vector.load %arg7[%c0_1, %c0_2] : memref<32x32xbf16, #tpu.memory_space<vmem>>, vector<32x32xbf16>
    %c0_3 = arith.constant 0 : index
    %c0_4 = arith.constant 0 : index
    %2 = vector.load %arg9[%c0_3, %c0_4] : memref<32x32xbf16, #tpu.memory_space<vmem>>, vector<32x32xbf16>
    %c0_5 = arith.constant 0 : index
    %c0_6 = arith.constant 0 : index
    %3 = vector.load %arg11[%c0_5, %c0_6] : memref<32x32xbf16, #tpu.memory_space<vmem>>, vector<32x32xbf16>
    %c0_7 = arith.constant 0 : index
    %c0_8 = arith.constant 0 : index
    %4 = vector.load %arg6[%c0_7, %c0_8] : memref<1x32xf32, #tpu.memory_space<vmem>>, vector<1x32xf32>
    %5 = vector.shape_cast %4 : vector<1x32xf32> to vector<32xf32>
    %c0_9 = arith.constant 0 : index
    %c0_10 = arith.constant 0 : index
    %6 = vector.load %arg8[%c0_9, %c0_10] : memref<1x32xf32, #tpu.memory_space<vmem>>, vector<1x32xf32>
    %7 = vector.shape_cast %6 : vector<1x32xf32> to vector<32xf32>
    %c0_11 = arith.constant 0 : index
    %c0_12 = arith.constant 0 : index
    %8 = vector.load %arg10[%c0_11, %c0_12] : memref<1x32xf32, #tpu.memory_space<vmem>>, vector<1x32xf32>
    %9 = vector.shape_cast %8 : vector<1x32xf32> to vector<32xf32>
    %c0_13 = arith.constant 0 : index
    %c0_14 = arith.constant 0 : index
    %10 = vector.load %arg12[%c0_13, %c0_14] : memref<1x32xf32, #tpu.memory_space<vmem>>, vector<1x32xf32>
    %11 = vector.shape_cast %10 : vector<1x32xf32> to vector<32xf32>
    %c0_i32 = arith.constant 0 : i32
    %12 = arith.cmpi eq, %arg1, %c0_i32 : i32
    %13 = arith.extui %12 : i1 to i32
    %c0_i32_15 = arith.constant 0 : i32
    %14 = arith.cmpi ne, %13, %c0_i32_15 : i32
    scf.if %14 {
      %c0_55 = arith.constant 0 : index
      %c0_56 = arith.constant 0 : index
      %c0_57 = arith.constant 0 : index
      %118 = vector.load %arg3[%c0_55, %c0_56, %c0_57] : memref<1x8x32xbf16, #tpu.memory_space<vmem>>, vector<1x8x32xbf16>
      %119 = vector.shape_cast %118 : vector<1x8x32xbf16> to vector<8x32xbf16>
      %c0_58 = arith.constant 0 : index
      %c0_59 = arith.constant 0 : index
      %c0_60 = arith.constant 0 : index
      %120 = vector.load %arg4[%c0_58, %c0_59, %c0_60] : memref<1x8x32xbf16, #tpu.memory_space<vmem>>, vector<1x8x32xbf16>
      %121 = vector.shape_cast %120 : vector<1x8x32xbf16> to vector<8x32xbf16>
      %cst_61 = arith.constant dense<0.000000e+00> : vector<8x32xf32>
      %122 = tpu.matmul %119, %1, %cst_61 {dimension_numbers = #tpu.dot_dimension_numbers<[1], [0], [0], [1], [0, 0, 1, 1], [], []>} : vector<8x32xbf16>, vector<32x32xbf16>, vector<8x32xf32> -> vector<8x32xf32>
      %123 = vector.shape_cast %7 : vector<32xf32> to vector<1x32xf32>
      %124 = vector.broadcast %123 : vector<1x32xf32> to vector<8x32xf32>
      %125 = arith.addf %122, %124 : vector<8x32xf32>
      %126 = arith.truncf %125 : vector<8x32xf32> to vector<8x32xbf16>
      %c0_62 = arith.constant 0 : index
      %c0_63 = arith.constant 0 : index
      %127 = vector.load %arg14[%c0_62, %c0_63] : memref<8x32xbf16, #tpu.memory_space<vmem>>, vector<8x32xbf16>
      tpu.vector_store %arg14[%c0_62, %c0_63], %126 {strides = array<i32>} : memref<8x32xbf16, #tpu.memory_space<vmem>>, vector<8x32xbf16>,
      %cst_64 = arith.constant dense<0.000000e+00> : vector<8x32xf32>
      %128 = tpu.matmul %119, %2, %cst_64 {dimension_numbers = #tpu.dot_dimension_numbers<[1], [0], [0], [1], [0, 0, 1, 1], [], []>} : vector<8x32xbf16>, vector<32x32xbf16>, vector<8x32xf32> -> vector<8x32xf32>
      %129 = vector.shape_cast %9 : vector<32xf32> to vector<1x32xf32>
      %130 = vector.broadcast %129 : vector<1x32xf32> to vector<8x32xf32>
      %131 = arith.addf %128, %130 : vector<8x32xf32>
      %132 = arith.truncf %131 : vector<8x32xf32> to vector<8x32xbf16>
      %c0_65 = arith.constant 0 : index
      %c0_66 = arith.constant 0 : index
      %133 = vector.load %arg15[%c0_65, %c0_66] : memref<8x32xbf16, #tpu.memory_space<vmem>>, vector<8x32xbf16>
      tpu.vector_store %arg15[%c0_65, %c0_66], %132 {strides = array<i32>} : memref<8x32xbf16, #tpu.memory_space<vmem>>, vector<8x32xbf16>,
      %cst_67 = arith.constant dense<0.000000e+00> : vector<8x32xf32>
      %134 = tpu.matmul %121, %1, %cst_67 {dimension_numbers = #tpu.dot_dimension_numbers<[1], [0], [0], [1], [0, 0, 1, 1], [], []>} : vector<8x32xbf16>, vector<32x32xbf16>, vector<8x32xf32> -> vector<8x32xf32>
      %135 = vector.shape_cast %7 : vector<32xf32> to vector<1x32xf32>
      %136 = vector.broadcast %135 : vector<1x32xf32> to vector<8x32xf32>
      %137 = arith.addf %134, %136 : vector<8x32xf32>
      %138 = arith.truncf %137 : vector<8x32xf32> to vector<8x32xbf16>
      %c0_68 = arith.constant 0 : index
      %c0_69 = arith.constant 0 : index
      %139 = vector.load %arg16[%c0_68, %c0_69] : memref<8x32xbf16, #tpu.memory_space<vmem>>, vector<8x32xbf16>
      tpu.vector_store %arg16[%c0_68, %c0_69], %138 {strides = array<i32>} : memref<8x32xbf16, #tpu.memory_space<vmem>>, vector<8x32xbf16>,
      %cst_70 = arith.constant dense<0.000000e+00> : vector<8x32xf32>
      %140 = tpu.matmul %121, %2, %cst_70 {dimension_numbers = #tpu.dot_dimension_numbers<[1], [0], [0], [1], [0, 0, 1, 1], [], []>} : vector<8x32xbf16>, vector<32x32xbf16>, vector<8x32xf32> -> vector<8x32xf32>
      %141 = vector.shape_cast %9 : vector<32xf32> to vector<1x32xf32>
      %142 = vector.broadcast %141 : vector<1x32xf32> to vector<8x32xf32>
      %143 = arith.addf %140, %142 : vector<8x32xf32>
      %144 = arith.truncf %143 : vector<8x32xf32> to vector<8x32xbf16>
      %c0_71 = arith.constant 0 : index
      %c0_72 = arith.constant 0 : index
      %145 = vector.load %arg17[%c0_71, %c0_72] : memref<8x32xbf16, #tpu.memory_space<vmem>>, vector<8x32xbf16>
      tpu.vector_store %arg17[%c0_71, %c0_72], %144 {strides = array<i32>} : memref<8x32xbf16, #tpu.memory_space<vmem>>, vector<8x32xbf16>,
    } else {
    }
    %c0_16 = arith.constant 0 : index
    %c0_17 = arith.constant 0 : index
    %c0_18 = arith.constant 0 : index
    %15 = vector.load %arg2[%c0_16, %c0_17, %c0_18] : memref<1x8x32xf32, #tpu.memory_space<vmem>>, vector<1x8x32xf32>
    %16 = vector.shape_cast %15 : vector<1x8x32xf32> to vector<8x32xf32>
    %c0_19 = arith.constant 0 : index
    %c0_20 = arith.constant 0 : index
    %17 = vector.load %arg14[%c0_19, %c0_20] : memref<8x32xbf16, #tpu.memory_space<vmem>>, vector<8x32xbf16>
    %c0_21 = arith.constant 0 : index
    %c0_22 = arith.constant 0 : index
    %18 = vector.load %arg15[%c0_21, %c0_22] : memref<8x32xbf16, #tpu.memory_space<vmem>>, vector<8x32xbf16>
    %19 = arith.truncf %16 : vector<8x32xf32> to vector<8x32xbf16>
    %cst = arith.constant dense<0.000000e+00> : vector<8x32xf32>
    %20 = tpu.matmul %19, %0, %cst {dimension_numbers = #tpu.dot_dimension_numbers<[1], [0], [0], [1], [0, 0, 1, 1], [], []>} : vector<8x32xbf16>, vector<32x32xbf16>, vector<8x32xf32> -> vector<8x32xf32>
    %21 = vector.shape_cast %5 : vector<32xf32> to vector<1x32xf32>
    %22 = vector.broadcast %21 : vector<1x32xf32> to vector<8x32xf32>
    %23 = arith.addf %20, %22 : vector<8x32xf32>
    %cst_23 = arith.constant 0.176776692 : f32
    %24 = vector.broadcast %cst_23 : f32 to vector<8x32xf32>
    %25 = arith.mulf %23, %24 : vector<8x32xf32>
    %26 = arith.truncf %25 : vector<8x32xf32> to vector<8x32xbf16>
    %cst_24 = arith.constant dense<0.000000e+00> : vector<8x8xf32>
    %27 = tpu.matmul %26, %17, %cst_24 {dimension_numbers = #tpu.dot_dimension_numbers<[1], [1], [0], [0], [0, 0, 1, 0], [], []>} : vector<8x32xbf16>, vector<8x32xbf16>, vector<8x8xf32> -> vector<8x8xf32>
    %cst_25 = arith.constant dense<0xFF800000> : vector<8xf32>
    %28 = vector.multi_reduction <maximumf>, %27, %cst_25 [1] : vector<8x8xf32> to vector<8xf32>
    %29 = vector.shape_cast %28 : vector<8xf32> to vector<8x1xf32>
    %30 = vector.broadcast %29 : vector<8x1xf32> to vector<8x8xf32>
    %31 = arith.subf %27, %30 : vector<8x8xf32>
    %32 = math.exp %31 : vector<8x8xf32>
    %cst_26 = arith.constant dense<0.000000e+00> : vector<8xf32>
    %33 = vector.multi_reduction <add>, %32, %cst_26 [1] : vector<8x8xf32> to vector<8xf32>
    %34 = vector.shape_cast %33 : vector<8xf32> to vector<8x1xf32>
    %35 = tpu.reciprocal %34 {approx = true} : vector<8x1xf32> -> vector<8x1xf32>
    %36 = vector.broadcast %35 : vector<8x1xf32> to vector<8x8xf32>
    %37 = arith.mulf %32, %36 : vector<8x8xf32>
    %38 = arith.truncf %37 : vector<8x8xf32> to vector<8x8xbf16>
    %cst_27 = arith.constant dense<0.000000e+00> : vector<8x32xf32>
    %39 = tpu.matmul %38, %18, %cst_27 {dimension_numbers = #tpu.dot_dimension_numbers<[1], [0], [0], [1], [0, 0, 1, 1], [], []>} : vector<8x8xbf16>, vector<8x32xbf16>, vector<8x32xf32> -> vector<8x32xf32>
    %40 = arith.truncf %39 : vector<8x32xf32> to vector<8x32xbf16>
    %cst_28 = arith.constant dense<0.000000e+00> : vector<8x32xf32>
    %41 = tpu.matmul %40, %3, %cst_28 {dimension_numbers = #tpu.dot_dimension_numbers<[1], [0], [0], [1], [0, 0, 1, 1], [], []>} : vector<8x32xbf16>, vector<32x32xbf16>, vector<8x32xf32> -> vector<8x32xf32>
    %42 = vector.shape_cast %11 : vector<32xf32> to vector<1x32xf32>
    %43 = vector.broadcast %42 : vector<1x32xf32> to vector<8x32xf32>
    %44 = arith.addf %41, %43 : vector<8x32xf32>
    %cst_29 = arith.constant dense<0.000000e+00> : vector<8xf32>
    %45 = vector.multi_reduction <add>, %44, %cst_29 [1] : vector<8x32xf32> to vector<8xf32>
    %46 = vector.shape_cast %45 : vector<8xf32> to vector<8x1xf32>
    %47 = arith.mulf %44, %44 : vector<8x32xf32>
    %cst_30 = arith.constant dense<0.000000e+00> : vector<8xf32>
    %48 = vector.multi_reduction <add>, %47, %cst_30 [1] : vector<8x32xf32> to vector<8xf32>
    %49 = vector.shape_cast %48 : vector<8xf32> to vector<8x1xf32>
    %cst_31 = arith.constant 3.125000e-02 : f32
    %50 = vector.broadcast %cst_31 : f32 to vector<8x1xf32>
    %51 = arith.mulf %46, %50 : vector<8x1xf32>
    %52 = arith.mulf %46, %51 : vector<8x1xf32>
    %53 = arith.subf %49, %52 : vector<8x1xf32>
    %cst_32 = arith.constant 0.000000e+00 : f32
    %54 = vector.broadcast %cst_32 : f32 to vector<8x1xf32>
    %55 = arith.maximumf %53, %54 : vector<8x1xf32>
    %cst_33 = arith.constant 0.0322580636 : f32
    %56 = vector.broadcast %cst_33 : f32 to vector<8x1xf32>
    %57 = arith.mulf %55, %56 : vector<8x1xf32>
    %58 = math.sqrt %57 : vector<8x1xf32>
    %59 = vector.broadcast %51 : vector<8x1xf32> to vector<8x32xf32>
    %60 = arith.subf %44, %59 : vector<8x32xf32>
    %cst_34 = arith.constant 9.99999997E-7 : f32
    %61 = vector.broadcast %cst_34 : f32 to vector<8x1xf32>
    %62 = arith.addf %58, %61 : vector<8x1xf32>
    %63 = vector.broadcast %62 : vector<8x1xf32> to vector<8x32xf32>
    %64 = arith.divf %60, %63 : vector<8x32xf32>
    %65 = arith.addf %16, %64 : vector<8x32xf32>
    %c0_35 = arith.constant 0 : index
    %c0_36 = arith.constant 0 : index
    %66 = vector.load %arg16[%c0_35, %c0_36] : memref<8x32xbf16, #tpu.memory_space<vmem>>, vector<8x32xbf16>
    %c0_37 = arith.constant 0 : index
    %c0_38 = arith.constant 0 : index
    %67 = vector.load %arg17[%c0_37, %c0_38] : memref<8x32xbf16, #tpu.memory_space<vmem>>, vector<8x32xbf16>
    %68 = arith.truncf %65 : vector<8x32xf32> to vector<8x32xbf16>
    %cst_39 = arith.constant dense<0.000000e+00> : vector<8x32xf32>
    %69 = tpu.matmul %68, %0, %cst_39 {dimension_numbers = #tpu.dot_dimension_numbers<[1], [0], [0], [1], [0, 0, 1, 1], [], []>} : vector<8x32xbf16>, vector<32x32xbf16>, vector<8x32xf32> -> vector<8x32xf32>
    %70 = vector.shape_cast %5 : vector<32xf32> to vector<1x32xf32>
    %71 = vector.broadcast %70 : vector<1x32xf32> to vector<8x32xf32>
    %72 = arith.addf %69, %71 : vector<8x32xf32>
    %cst_40 = arith.constant 0.176776692 : f32
    %73 = vector.broadcast %cst_40 : f32 to vector<8x32xf32>
    %74 = arith.mulf %72, %73 : vector<8x32xf32>
    %75 = arith.truncf %74 : vector<8x32xf32> to vector<8x32xbf16>
    %cst_41 = arith.constant dense<0.000000e+00> : vector<8x8xf32>
    %76 = tpu.matmul %75, %66, %cst_41 {dimension_numbers = #tpu.dot_dimension_numbers<[1], [1], [0], [0], [0, 0, 1, 0], [], []>} : vector<8x32xbf16>, vector<8x32xbf16>, vector<8x8xf32> -> vector<8x8xf32>
    %cst_42 = arith.constant dense<0xFF800000> : vector<8xf32>
    %77 = vector.multi_reduction <maximumf>, %76, %cst_42 [1] : vector<8x8xf32> to vector<8xf32>
    %78 = vector.shape_cast %77 : vector<8xf32> to vector<8x1xf32>
    %79 = vector.broadcast %78 : vector<8x1xf32> to vector<8x8xf32>
    %80 = arith.subf %76, %79 : vector<8x8xf32>
    %81 = math.exp %80 : vector<8x8xf32>
    %cst_43 = arith.constant dense<0.000000e+00> : vector<8xf32>
    %82 = vector.multi_reduction <add>, %81, %cst_43 [1] : vector<8x8xf32> to vector<8xf32>
    %83 = vector.shape_cast %82 : vector<8xf32> to vector<8x1xf32>
    %84 = tpu.reciprocal %83 {approx = true} : vector<8x1xf32> -> vector<8x1xf32>
    %85 = vector.broadcast %84 : vector<8x1xf32> to vector<8x8xf32>
    %86 = arith.mulf %81, %85 : vector<8x8xf32>
    %87 = arith.truncf %86 : vector<8x8xf32> to vector<8x8xbf16>
    %cst_44 = arith.constant dense<0.000000e+00> : vector<8x32xf32>
    %88 = tpu.matmul %87, %67, %cst_44 {dimension_numbers = #tpu.dot_dimension_numbers<[1], [0], [0], [1], [0, 0, 1, 1], [], []>} : vector<8x8xbf16>, vector<8x32xbf16>, vector<8x32xf32> -> vector<8x32xf32>
    %89 = arith.truncf %88 : vector<8x32xf32> to vector<8x32xbf16>
    %cst_45 = arith.constant dense<0.000000e+00> : vector<8x32xf32>
    %90 = tpu.matmul %89, %3, %cst_45 {dimension_numbers = #tpu.dot_dimension_numbers<[1], [0], [0], [1], [0, 0, 1, 1], [], []>} : vector<8x32xbf16>, vector<32x32xbf16>, vector<8x32xf32> -> vector<8x32xf32>
    %91 = vector.shape_cast %11 : vector<32xf32> to vector<1x32xf32>
    %92 = vector.broadcast %91 : vector<1x32xf32> to vector<8x32xf32>
    %93 = arith.addf %90, %92 : vector<8x32xf32>
    %cst_46 = arith.constant dense<0.000000e+00> : vector<8xf32>
    %94 = vector.multi_reduction <add>, %93, %cst_46 [1] : vector<8x32xf32> to vector<8xf32>
    %95 = vector.shape_cast %94 : vector<8xf32> to vector<8x1xf32>
    %96 = arith.mulf %93, %93 : vector<8x32xf32>
    %cst_47 = arith.constant dense<0.000000e+00> : vector<8xf32>
    %97 = vector.multi_reduction <add>, %96, %cst_47 [1] : vector<8x32xf32> to vector<8xf32>
    %98 = vector.shape_cast %97 : vector<8xf32> to vector<8x1xf32>
    %cst_48 = arith.constant 3.125000e-02 : f32
    %99 = vector.broadcast %cst_48 : f32 to vector<8x1xf32>
    %100 = arith.mulf %95, %99 : vector<8x1xf32>
    %101 = arith.mulf %95, %100 : vector<8x1xf32>
    %102 = arith.subf %98, %101 : vector<8x1xf32>
    %cst_49 = arith.constant 0.000000e+00 : f32
    %103 = vector.broadcast %cst_49 : f32 to vector<8x1xf32>
    %104 = arith.maximumf %102, %103 : vector<8x1xf32>
    %cst_50 = arith.constant 0.0322580636 : f32
    %105 = vector.broadcast %cst_50 : f32 to vector<8x1xf32>
    %106 = arith.mulf %104, %105 : vector<8x1xf32>
    %107 = math.sqrt %106 : vector<8x1xf32>
    %108 = vector.broadcast %100 : vector<8x1xf32> to vector<8x32xf32>
    %109 = arith.subf %93, %108 : vector<8x32xf32>
    %cst_51 = arith.constant 9.99999997E-7 : f32
    %110 = vector.broadcast %cst_51 : f32 to vector<8x1xf32>
    %111 = arith.addf %107, %110 : vector<8x1xf32>
    %112 = vector.broadcast %111 : vector<8x1xf32> to vector<8x32xf32>
    %113 = arith.divf %109, %112 : vector<8x32xf32>
    %114 = arith.addf %65, %113 : vector<8x32xf32>
    %c0_52 = arith.constant 0 : index
    %c0_53 = arith.constant 0 : index
    %c0_54 = arith.constant 0 : index
    %115 = vector.load %arg13[%c0_52, %c0_53, %c0_54] : memref<1x8x32xf32, #tpu.memory_space<vmem>>, vector<1x8x32xf32>
    %116 = vector.shape_cast %115 : vector<1x8x32xf32> to vector<8x32xf32>
    %117 = vector.shape_cast %114 : vector<8x32xf32> to vector<1x8x32xf32>
    tpu.vector_store %arg13[%c0_52, %c0_53, %c0_54], %117 {strides = array<i32>} : memref<1x8x32xf32, #tpu.memory_space<vmem>>, vector<1x8x32xf32>,
    return
  }
  func.func @transform_0(%arg0: i32, %arg1: i32) -> (i32, i32, i32) {
    %c0_i32 = arith.constant 0 : i32
    %c0_i32_0 = arith.constant 0 : i32
    return %arg0, %arg1, %c0_i32 : i32, i32, i32
  }
  func.func @transform_1(%arg0: i32, %arg1: i32) -> (i32, i32, i32) {
    %c0_i32 = arith.constant 0 : i32
    %c0_i32_0 = arith.constant 0 : i32
    %c0_i32_1 = arith.constant 0 : i32
    return %arg0, %c0_i32, %c0_i32_0 : i32, i32, i32
  }
  func.func @transform_2(%arg0: i32, %arg1: i32) -> (i32, i32, i32) {
    %c0_i32 = arith.constant 0 : i32
    %c0_i32_0 = arith.constant 0 : i32
    %c0_i32_1 = arith.constant 0 : i32
    return %arg0, %c0_i32, %c0_i32_0 : i32, i32, i32
  }
  func.func @transform_3(%arg0: i32, %arg1: i32) -> (i32, i32) {
    %c0_i32 = arith.constant 0 : i32
    %c0_i32_0 = arith.constant 0 : i32
    %c0_i32_1 = arith.constant 0 : i32
    return %c0_i32, %c0_i32_0 : i32, i32
  }
  func.func @transform_4(%arg0: i32, %arg1: i32) -> (i32, i32) {
    %c0_i32 = arith.constant 0 : i32
    %c0_i32_0 = arith.constant 0 : i32
    %c0_i32_1 = arith.constant 0 : i32
    return %c0_i32, %c0_i32_0 : i32, i32
  }
  func.func @transform_5(%arg0: i32, %arg1: i32) -> (i32, i32) {
    %c0_i32 = arith.constant 0 : i32
    %c0_i32_0 = arith.constant 0 : i32
    %c0_i32_1 = arith.constant 0 : i32
    return %c0_i32, %c0_i32_0 : i32, i32
  }
  func.func @transform_6(%arg0: i32, %arg1: i32) -> (i32, i32) {
    %c0_i32 = arith.constant 0 : i32
    %c0_i32_0 = arith.constant 0 : i32
    %c0_i32_1 = arith.constant 0 : i32
    return %c0_i32, %c0_i32_0 : i32, i32
  }
  func.func @transform_7(%arg0: i32, %arg1: i32) -> (i32, i32) {
    %c0_i32 = arith.constant 0 : i32
    %c0_i32_0 = arith.constant 0 : i32
    %c0_i32_1 = arith.constant 0 : i32
    return %c0_i32, %c0_i32_0 : i32, i32
  }
  func.func @transform_8(%arg0: i32, %arg1: i32) -> (i32, i32) {
    %c0_i32 = arith.constant 0 : i32
    %c0_i32_0 = arith.constant 0 : i32
    %c0_i32_1 = arith.constant 0 : i32
    return %c0_i32, %c0_i32_0 : i32, i32
  }
  func.func @transform_9(%arg0: i32, %arg1: i32) -> (i32, i32) {
    %c0_i32 = arith.constant 0 : i32
    %c0_i32_0 = arith.constant 0 : i32
    %c0_i32_1 = arith.constant 0 : i32
    return %c0_i32, %c0_i32_0 : i32, i32
  }
  func.func @transform_10(%arg0: i32, %arg1: i32) -> (i32, i32) {
    %c0_i32 = arith.constant 0 : i32
    %c0_i32_0 = arith.constant 0 : i32
    %c0_i32_1 = arith.constant 0 : i32
    return %c0_i32, %c0_i32_0 : i32, i32
  }
  func.func @transform_11(%arg0: i32, %arg1: i32) -> (i32, i32, i32) {
    %c0_i32 = arith.constant 0 : i32
    %c0_i32_0 = arith.constant 0 : i32
    return %arg0, %arg1, %c0_i32 : i32, i32, i32
  }
}

</mosaic_0001>

<bundles_post_ra>
// kernel: tpu_custom_call.1
= control target key start
LH: loop header
LB: loop body
LE: loop exit
PB: predicated region body
PF: predicated region fallthrough
CT: control target
= control target key end

     0   :  { %s2607_s0 = inlined_call_operand.hbm [shape: f32[2,8,32], index: 0, kind: input, shape index: {}]   ;;  %s2608_s1 = inlined_call_operand.hbm [shape: bf16[2,8,32], index: 1, kind: input, shape index: {}]   ;;  %s2609_s2 = inlined_call_operand.hbm [shape: bf16[2,8,32], index: 2, kind: input, shape index: {}]   ;;  %s2610_s3 = inlined_call_operand.hbm [shape: bf16[32,32], index: 3, kind: input, shape index: {}]   ;;  %s2611_s4 = inlined_call_operand.hbm [shape: f32[1,32], index: 4, kind: input, shape index: {}]   ;;  %s2612_s5 = inlined_call_operand.hbm [shape: bf16[32,32], index: 5, kind: input, shape index: {}]   ;;  %s2613_s6 = inlined_call_operand.hbm [shape: f32[1,32], index: 6, kind: input, shape index: {}]   ;;  %s2614_s7 = inlined_call_operand.hbm [shape: bf16[32,32], index: 7, kind: input, shape index: {}]   ;;  %s2615_s8 = inlined_call_operand.hbm [shape: f32[1,32], index: 8, kind: input, shape index: {}]   ;;  %s2616_s9 = inlined_call_operand.vmem [shape: bf16[32,32], index: 9, kind: input, shape index: {}]   ;;  %s2617_s10 = inlined_call_operand.vmem [shape: f32[1,32], index: 10, kind: input, shape index: {}]   ;;  %s2618_s11 = inlined_call_operand.hbm [shape: f32[2,8,32], index: 11, kind: output, shape index: {}]  }
   0x1   :  { %2636 = sst [smem:[#allocation35_spill]] %s2608_s1 }
   0x2   :  { %2637 = sst [smem:[#allocation36_spill]] %s2610_s3 }
   0x3   :  { %2638 = sst [smem:[#allocation37_spill]] %s2612_s5 }
   0x4   :  { %2639 = sst [smem:[#allocation38_spill]] %s2614_s7 }
   0x5   :  { %2640 = sst [smem:[#allocation39_spill]] %s2618_s11 }
   0x6   :  { %16 = vsyncpa [#allocation7], 0 }
   0x7   :  { %18 = vsyncpa [#allocation7 + $0x1], 0 }
   0x8   :  { %19 = vsyncpa [#allocation10], 0 }
   0x9   :  { %21 = vsyncpa [#allocation10 + $0x1], 0 }
   0xa   :  { %22 = vsyncpa [#allocation13], 0 }
   0xb   :  { %23 = vsyncpa [#allocation16], 0 }
   0xc   :  { %24 = vsyncpa [#allocation19], 0 }
   0xd   :  { %25 = vsyncpa [#allocation8], 0 }
   0xe   :  { %27 = vsyncpa [#allocation8 + $0x1], 0  ;;  %s2234_s17 = smov 0   ;;  %s2236_s18 = smov 0  }
   0xf   :  { %s2238_s19 = smov 0   ;;  %s2240_s20 = smov 0  }
  0x10   :  { %s2242_s21 = smov 0   ;;  %s2244_s22 = smov 0  }
  0x11 LB: > { %2641 = sst [smem:[#allocation28_spill]] %s2138_s17  ;;  %s2265_s23 = sadd.s32 4294967295, %s2158_s22   ;;  %s2158_s22 = sphi %s2244_s22, %s33_s22   ;;  %s2154_s21 = sphi %s2242_s21, %s2686_s21   ;;  %s2150_s20 = sphi %s2240_s20, %s2685_s20   ;;  %s2146_s19 = sphi %s2238_s19, %s2681_s19   ;;  %s2142_s18 = sphi %s2236_s18, %s2684_s18   ;;  %s2138_s17 = sphi %s2234_s17, %s2683_s17  }
  0x12   : > { %2642 = sst [smem:[#allocation29_spill]] %s2146_s19  ;;  %p1488_p0 = scmp.ge.s32.totalorder %s2158_s22, 1 }
  0x13   : > { %2643 = sst [smem:[#allocation30_spill]] %s2158_s22  ;;  %p2619_p1 = scmp.eq.s32.totalorder %s2265_s23, 0 }
  0x14   : > { %p326_p2 = scmp.lt.s32.totalorder %s2158_s22, 3  ;;  %s2160_s25 = smov [#allocation12]  }
  0x15   : > { %s338_s26 = sshll.u32 %s2160_s25, 4  ;;  %s2161_s28 = smov [#allocation15]   ;;  %s339_s26 = int_to_ptr.vmem [resolvable:$true] %s338_s26 }
  0x16   : > { %p2270_p3 = pnand %p1488_p0, %p326_p2  ;;  %s362_s29 = sshll.u32 %s2161_s28, 4  ;;  %s363_s29 = int_to_ptr.vmem [resolvable:$true] %s362_s29 }
  0x17   : > { %s2162_s30 = smov [#allocation18]   ;;  %s1833_s14 = scalar_lea.vmem %s339_s26, 256 }
  0x18   : > { %s2644_s24 = scalar_select %p2270_p3, 1, 0 }
  0x19   : > { %p1693_p4 = pneg %p2270_p3  ;;  %s386_s12 = sshll.u32 %s2162_s30, 4  ;;  %s387_s12 = int_to_ptr.vmem [resolvable:$true] %s386_s12 }
  0x1a   : > { %p1834_p8 = scmp.ne.s32.totalorder %s339_s26, %s1833_s14  ;;  %p1841_p11 = scmp.lt.s32.totalorder %s339_s26, %s339_s26 }
  0x1b   : > { %p2279_p6 = pnand %p1693_p4, %p2619_p1  ;;  %p1842_p12 = scmp.lt.s32.totalorder %s1833_s14, %s1833_s14 }
  0x1d   : > { %p2285_p7 = pneg %p2279_p6  ;;  %p1843_p13 = por %p1842_p12, %p1841_p11 }
  0x1f   : > { %p1836_p9 = pnand %p1834_p8, %p2285_p7 }
  0x21   : > { %p1837_p10 = pneg %p1836_p9 }
  0x23   : > { %p1844_p0 = pnand %p1843_p13, %p1837_p10 }
  0x25   : > { %1847 = shalt.err (!%p1844_p0)
}
  0x26   : > { %s2163_s15 = smov 64   ;;  %s2164_s16 = smov 4  }
  0x27   : > { %s2647_s3 = sld [smem:[#allocation36_spill]]  ;;  %s1859_s30 = scalar_lea.vmem %s363_s29, 256 }
  0x28   : > { %p1860_p2 = scmp.ne.s32.totalorder %s363_s29, %s1859_s30  ;;  %p1867_p9 = scmp.lt.s32.totalorder %s363_s29, %s363_s29 }
  0x29   : > { %p1868_p5 = scmp.lt.s32.totalorder %s1859_s30, %s1859_s30 }
  0x2a   : > { %p1862_p4 = pnand %p1860_p2, %p2285_p7 }
  0x2b   : > { %p1869_p1 = por %p1868_p5, %p1867_p9 }
  0x2c   : > { %p1863_p8 = pneg %p1862_p4 }
  0x2d   : > { %1696 = dma.hbm_to_vmem [thread:$0]  (!%p2279_p6), %s2647_s3, 256, %s339_s26, [#allocation13], %s2163_s15, %s2163_s15, %s2164_s16  }
  0x2e   : > { %p1870_p11 = pnand %p1869_p1, %p1863_p8 }
  0x30   : > { %1873 = shalt.err (!%p1870_p11)
}
  0x31   : > { %s2648_s5 = sld [smem:[#allocation37_spill]]  ;;  %s1885_s25 = scalar_lea.vmem %s387_s12, 256 }
  0x32   : > { %p1886_p10 = scmp.ne.s32.totalorder %s387_s12, %s1885_s25  ;;  %p1893_p0 = scmp.lt.s32.totalorder %s387_s12, %s387_s12 }
  0x33   : > { %p1894_p2 = scmp.lt.s32.totalorder %s1885_s25, %s1885_s25 }
  0x34   : > { %p1888_p12 = pnand %p1886_p10, %p2285_p7 }
  0x35   : > { %p1895_p4 = por %p1894_p2, %p1893_p0 }
  0x36   : > { %p1889_p13 = pneg %p1888_p12 }
  0x37   : > { %1702 = dma.hbm_to_vmem [thread:$0]  (!%p2279_p6), %s2648_s5, 256, %s363_s29, [#allocation16], %s2163_s15, %s2163_s15, %s2164_s16  }
  0x38   : > { %p1896_p3 = pnand %p1895_p4, %p1889_p13 }
  0x3a   : > { %1899 = shalt.err (!%p1896_p3)
}
  0x3b   : > { %s2649_s7 = sld [smem:[#allocation38_spill]]  ;;  %s1487_s11 = sadd.s32 4294967294, %s2158_s22  }
  0x3c   : > { %s45_s29 = sadd.s32 1, %s2154_s21  ;;  %s54_s30 = sadd.s32 1, %s2146_s19 }
  0x3d   : > { %p47_p1 = scmp.ge.s32.totalorder %s45_s29, 2  ;;  %p61_p3 = scmp.ne.s32.totalorder %s2146_s19, %s2142_s18 }
  0x3e   : > { %p62_p5 = scmp.eq.s32.totalorder %s2158_s22, 0  ;;  %p67_p8 = scmp.ne.s32.totalorder %s2142_s18, %s2138_s17 }
  0x3f   : > { %s2688_s29 = smov (%p47_p1, %s45_s29), 0  ;;  %p2651_p11 = scmp.eq.s32.totalorder %s2265_s23, 0 }
  0x40   : > { %2650 = sst [smem:[#allocation31_spill]] %s2688_s29  ;;  %p63_p9 = por %p62_p5, %p61_p3 }
  0x41   : > { %1708 = dma.hbm_to_vmem [thread:$0]  (!%p2279_p6), %s2649_s7, 256, %s387_s12, [#allocation19], %s2163_s15, %s2163_s15, %s2164_s16  }
  0x42   : > { %p2322_p10 = por %p2651_p11, %p67_p8  ;;  %s49_s12 = ssub.s32 %s2154_s21, %s2688_s29 }
  0x43   : > { %p313_p12 = scmp.eq.s32.totalorder %s2265_s23, 1  ;;  %p52_p13 = scmp.eq.s32.totalorder %s49_s12, 0 }
  0x44   : > { %s2652_s14 = scalar_select %p2322_p10, 1, 0 }
  0x45   : > { %p319_p0 = scmp.eq.s32.totalorder %s1487_s11, 1  ;;  %p2329_p2 = por %p313_p12, %p61_p3 }
  0x46   : > { %p1732_p4 = scmp.lt.s32.totalorder %s2158_s22, 2  ;;  %s2342_s26 = sand.u32 1, %s2146_s19  }
  0x47   : > { %s2653_s15 = scalar_select %p2329_p2, 1, 0 }
  0x48   : > { %s2335_s16 = scalar_select %p52_p13, %s2146_s19, %s54_s30  }
  0x49   : > { %2654 = sst [smem:[#allocation32_spill]] %s2653_s15  ;;  %p2337_p1 = por %p319_p0, %p67_p8 }
  0x4a   : > { %2655 = sst [smem:[#allocation33_spill]] %s2335_s16  ;;  %p2344_p5 = pnand %p1732_p4, %p63_p9 }
  0x4b   : > { %s2656_s25 = scalar_select %p2337_p1, 1, 0 }
  0x4c   : > { %s2658_s28 = scalar_select %p2344_p5, 1, 0 }
  0x4d   : > { %2657 = sst [smem:[#allocation34_spill]] %s2656_s25  ;;  %s436_s11 = sand.u32 1, %s2158_s22  }
  0x4e   : > { %s2628_s12 = sshll.u32 %s2342_s26, 2  ;;  %s1499_s3 = sshll.u32 %s2154_s21, 6 }
  0x4f   : > { %s440_s30 = scalar_lea.vmem [#allocation9], %s2628_s12  ;;  %s2659_s1 = sld [smem:[#allocation35_spill]] }
  0x50   : > { %s447_s5 = sshll.u32 %s440_s30, 4  ;;  %s2356_s19 = scalar_lea.sflag [#allocation10], %s436_s11  ;;  %s448_s5 = int_to_ptr.vmem [resolvable:$true] %s447_s5 }
  0x51   : > { %p2631_p3 = pneg %p2344_p5  ;;  %s1913_s25 = scalar_lea.vmem %s448_s5, 64 }
  0x52   : > { %p1914_p8 = scmp.ne.s32.totalorder %s448_s5, %s1913_s25  ;;  %s2165_s22 = smov [#allocation9]  }
  0x53   : > { %s1918_s17 = sshll.u32 %s2165_s22, 4  ;;  %s1919_s17 = int_to_ptr.vmem [resolvable:$false] %s1918_s17 }
  0x54   : > { %p1916_p9 = pnand %p1914_p8, %p2631_p3  ;;  %s1920_s12 = scalar_lea.vmem %s1919_s17, 128 }
  0x55   : > { %s445_s16 = scalar_lea.hbm %s2659_s1, %s1499_s3  ;;  %p1921_p12 = scmp.lt.s32.totalorder %s448_s5, %s1919_s17 }
  0x56   : > { %p1917_p11 = pneg %p1916_p9  ;;  %p1922_p13 = scmp.lt.s32.totalorder %s1920_s12, %s1913_s25 }
  0x58   : > { %p1923_p0 = por %p1922_p13, %p1921_p12 }
  0x5a   : > { %p1924_p4 = pnand %p1923_p0, %p1917_p11 }
  0x5c   : > { %1927 = shalt.err (!%p1924_p4)
}
  0x5d   : > { %1718 = dma.hbm_to_vmem [thread:$0]  (!%p2344_p5), %s445_s16, 64, %s448_s5, %s2356_s19  }
  0x5e   : > { %s2369_s11 = scalar_lea.hbm %s2609_s2, %s1499_s3  ;;  %s2166_s30 = smov [#allocation14]  }
  0x5f   : > { %s352_s1 = sshll.u32 %s2166_s30, 4  ;;  %s2167_s22 = smov [#allocation17]   ;;  %s353_s1 = int_to_ptr.vmem [resolvable:$true] %s352_s1 }
  0x60   : > { %s376_s15 = sshll.u32 %s2167_s22, 4  ;;  %s1939_s17 = scalar_lea.vmem %s353_s1, 16  ;;  %s377_s15 = int_to_ptr.vmem [resolvable:$true] %s376_s15 }
  0x61   : > { %p1940_p8 = scmp.ne.s32.totalorder %s353_s1, %s1939_s17  ;;  %s1946_s25 = scalar_lea.vmem %s353_s1, 32 }
  0x62   : > { %p1947_p12 = scmp.lt.s32.totalorder %s353_s1, %s353_s1  ;;  %p1948_p13 = scmp.lt.s32.totalorder %s1946_s25, %s1939_s17 }
  0x63   : > { %p1942_p9 = pnand %p1940_p8, %p2285_p7 }
  0x64   : > { %p1949_p0 = por %p1948_p13, %p1947_p12 }
  0x65   : > { %p1943_p11 = pneg %p1942_p9 }
  0x67   : > { %p1950_p4 = pnand %p1949_p0, %p1943_p11 }
  0x69   : > { %1953 = shalt.err (!%p1950_p4)
}
  0x6a   : > { %1699 = dma.hbm_to_vmem [thread:$0]  (!%p2279_p6), %s2611_s4, 16, %s353_s1, [#allocation13]  }
  0x6b   : > { %s1965_s16 = scalar_lea.vmem %s377_s15, 16  ;;  %s1972_s12 = scalar_lea.vmem %s377_s15, 32 }
  0x6c   : > { %p1966_p3 = scmp.ne.s32.totalorder %s377_s15, %s1965_s16  ;;  %p1973_p8 = scmp.lt.s32.totalorder %s377_s15, %s377_s15 }
  0x6d   : > { %p1974_p9 = scmp.lt.s32.totalorder %s1972_s12, %s1965_s16 }
  0x6e   : > { %p1968_p1 = pnand %p1966_p3, %p2285_p7 }
  0x6f   : > { %p1975_p10 = por %p1974_p9, %p1973_p8 }
  0x70   : > { %p1969_p2 = pneg %p1968_p1 }
  0x72   : > { %p1976_p5 = pnand %p1975_p10, %p1969_p2 }
  0x74   : > { %1979 = shalt.err (!%p1976_p5)
}
  0x75   : > { %1705 = dma.hbm_to_vmem [thread:$0]  (!%p2279_p6), %s2613_s6, 16, %s377_s15, [#allocation16]  }
  0x76   : > { %s2168_s1 = smov [#allocation20]   ;;  %s1496_s22 = sshll.u32 %s2342_s26, 3 }
  0x77   : > { %s400_s30 = sshll.u32 %s2168_s1, 4  ;;  %s401_s30 = int_to_ptr.vmem [resolvable:$true] %s400_s30 }
  0x78   : > { %s1991_s17 = scalar_lea.vmem %s401_s30, 16  ;;  %s1998_s25 = scalar_lea.vmem %s401_s30, 32 }
  0x79   : > { %p1992_p1 = scmp.ne.s32.totalorder %s401_s30, %s1991_s17  ;;  %p1999_p10 = scmp.lt.s32.totalorder %s401_s30, %s401_s30 }
  0x7a   : > { %p2000_p2 = scmp.lt.s32.totalorder %s1998_s25, %s1991_s17 }
  0x7b   : > { %p1994_p3 = pnand %p1992_p1, %p2285_p7 }
  0x7c   : > { %p2001_p5 = por %p2000_p2, %p1999_p10 }
  0x7d   : > { %p1995_p11 = pneg %p1994_p3 }
  0x7f   : > { %p2002_p12 = pnand %p2001_p5, %p1995_p11 }
  0x81   : > { %2005 = shalt.err (!%p2002_p12)
}
  0x82   : > { %1711 = dma.hbm_to_vmem [thread:$0]  (!%p2279_p6), %s2615_s8, 16, %s401_s30, [#allocation19]  }
  0x83   : > { %s1497_s15 = sshll.u32 %s2154_s21, 7  ;;  %s421_s16 = scalar_lea.vmem [#allocation6], %s1496_s22 }
  0x84   : > { %s429_s13 = sshll.u32 %s421_s16, 4  ;;  %s427_s29 = scalar_lea.hbm %s2607_s0, %s1497_s15  ;;  %s430_s13 = int_to_ptr.vmem [resolvable:$true] %s429_s13 }
  0x85   : > { %s418_s1 = scalar_lea.sflag [#allocation7], %s2342_s26  ;;  %s2019_s17 = scalar_lea.vmem %s430_s13, 128 }
  0x86   : > { %p2020_p7 = scmp.ne.s32.totalorder %s430_s13, %s2019_s17  ;;  %p2660_p13 = scmp.ne.s32.totalorder %s2658_s28, 0 }
  0x87   : > { %s2169_s27 = smov [#allocation6]  }
  0x88   : > { %p2661_p0 = pneg %p2660_p13  ;;  %s2024_s25 = sshll.u32 %s2169_s27, 4  ;;  %s2025_s25 = int_to_ptr.vmem [resolvable:$false] %s2024_s25 }
  0x89   : > { %s2026_s3 = scalar_lea.vmem %s2025_s25, 256  ;;  %p2027_p6 = scmp.lt.s32.totalorder %s430_s13, %s2025_s25 }
  0x8a   : > { %p2022_p4 = pnand %p2020_p7, %p2661_p0  ;;  %p2028_p9 = scmp.lt.s32.totalorder %s2026_s3, %s2019_s17 }
  0x8c   : > { %p2023_p8 = pneg %p2022_p4  ;;  %p2029_p1 = por %p2028_p9, %p2027_p6 }
  0x8e   : > { %p2030_p3 = pnand %p2029_p1, %p2023_p8 }
  0x90   : > { %2033 = shalt.err (!%p2030_p3)
}
  0x91   : > { %1715 = dma.hbm_to_vmem [thread:$0]  (!%p2660_p13), %s427_s29, 128, %s430_s13, %s418_s1  }
  0x92   : > { %s2662_s30 = sshll.u32 %s2342_s26, 2  ;;  %p2663_p10 = pmov %p2661_p0 }
  0x93   : > { %s458_s22 = scalar_lea.vmem [#allocation11], %s2662_s30  ;;  %s2170_s16 = smov [#allocation11]  }
  0x94   : > { %s465_s5 = sshll.u32 %s458_s22, 4  ;;  %s2052_s12 = sshll.u32 %s2170_s16, 4  ;;  %s466_s5 = int_to_ptr.vmem [resolvable:$true] %s465_s5  ;;  %s2053_s12 = int_to_ptr.vmem [resolvable:$false] %s2052_s12 }
  0x95   : > { %s2047_s15 = scalar_lea.vmem %s466_s5, 64  ;;  %s2054_s7 = scalar_lea.vmem %s2053_s12, 128 }
  0x96   : > { %p2048_p11 = scmp.ne.s32.totalorder %s466_s5, %s2047_s15  ;;  %p2055_p12 = scmp.lt.s32.totalorder %s466_s5, %s2053_s12 }
  0x97   : > { %p2056_p7 = scmp.lt.s32.totalorder %s2054_s7, %s2047_s15 }
  0x98   : > { %p2050_p2 = pnand %p2048_p11, %p2663_p10 }
  0x99   : > { %p2057_p0 = por %p2056_p7, %p2055_p12 }
  0x9a   : > { %p2051_p5 = pneg %p2050_p2 }
  0x9c   : > { %p2058_p4 = pnand %p2057_p0, %p2051_p5 }
  0x9e   : > { %2061 = shalt.err (!%p2058_p4)
}
  0x9f   : > { %1721 = dma.hbm_to_vmem [thread:$0]  (!%p2660_p13), %s2369_s11, 64, %s466_s5, %s2356_s19  }
  0xa0   : > { %p2664_p8 = scmp.ne.s32.totalorder %s2644_s24, 0 }
  0xa1   : > { %s2415_s26 = sand.u32 (!%p2664_p8), 1, %s2142_s18   ;;  %p2665_p6 = scmp.ne.s32.totalorder (!%p2664_p8), %s2652_s14, 0 }
  0xa2   : > { %474 = sbr.rel (%p2664_p8) target bundleno = 2788 (0xae4), region = 64  ;;  %s1503_s13 = sshll.u32 (!%p2664_p8), %s2415_s26, 3 }
  0xa3   : > { %s477_s29 = scalar_lea.sflag (!%p2664_p8), [#allocation7], %s2415_s26  ;;  %s2421_s1 = scalar_lea.vmem (!%p2664_p8), [#allocation6], %s1503_s13 }
  0xa7   : > { %2113 = dma.done.wait (%p2665_p6), %s477_s29, 128  }
  0xa8   : > { %2115 = vsyncadd (%p2665_p6), %s477_s29, 4294967168  ;;  %s485_s19 = sand.u32 1, %s2265_s23   ;;  %s1504_s24 = sshll.u32 %s2415_s26, 2 }
  0xa9   : > { %s486_s28 = scalar_lea.sflag [#allocation10], %s485_s19  ;;  %s489_s11 = scalar_lea.vmem [#allocation9], %s1504_s24 }
  0xaa   : > { %2117 = dma.done.wait (%p2665_p6), %s486_s28, 128  }
  0xab   : > { %2119 = vsyncadd (%p2665_p6), %s486_s28, 4294967168  ;;  %s2433_s17 = scalar_lea.vmem [#allocation11], %s1504_s24  ;;  %p2666_p13 = scmp.eq.s32.totalorder %s2265_s23, 0 }
  0xad   : > { %2121 = dma.done.wait (%p2666_p13), [#allocation13], 272   ;;  %p2667_p9 = pmov %p2666_p13 }
  0xaf   : > { %2123 = vsyncadd (%p2667_p9), [#allocation13], 4294967024  ;;  %p2668_p1 = pmov %p2667_p9 }
  0xb1   : > { %2125 = dma.done.wait (%p2668_p1), [#allocation16], 272   ;;  %p2669_p3 = pmov %p2668_p1 }
  0xb2   : > { %p2670_p11 = pmov %p2668_p1 }
  0xb3   : > { %2127 = vsyncadd (%p2669_p3), [#allocation16], 4294967024 }
  0xb4   : > { %2129 = dma.done.wait (%p2670_p11), [#allocation19], 272   ;;  %p2671_p10 = pmov %p2668_p1 }
  0xb5   : > { %v2171_v0 = vmov 0.0   ;;  %vm2172_vm0 = vmmov 0   ;;  %v1798_v1 = vld [vmem:[#allocation15 + $0x8] sm:$0xff]   ;;  %v1799_v2 = vld [vmem:[#allocation15] sm:$0xff]   ;;  %vm616_vm1 = vcmask 261120   ;;  %v1803_v5 = vld [vmem:[#allocation18] sm:$0xff]  }
  0xb6   : > { %2131 = vsyncadd (%p2671_p10), [#allocation19], 4294967024  ;;  %1573 = vmatprep.subr.bf16.mxu0 %v2171_v0  ;;  %1577 = vmatprep.mubr.msk.bf16.mxu0 %vm2172_vm0, %v2171_v0  ;;  %v1802_v3 = vld [vmem:[#allocation18 + $0x8] sm:$0xff]   ;;  %v597_v6 = vld [vmem:[%s2433_s17] sm:$0xf]  ;;  %vm661_vm2 = vcmask 257024  }
  0xb7   : > { %1581 = vmatprep.subr.bf16.mxu1 %v2171_v0  ;;  %1585 = vmatprep.mubr.msk.bf16.mxu1 %vm2172_vm0, %v2171_v0  ;;  %v596_v4 = vld [vmem:[%s489_s11] sm:$0xf]  ;;  %v2462_v7 = vld [vmem:[#allocation12 + $0x8] sm:$0xff]   ;;  %v2471_v8 = vld [vmem:[#allocation12] sm:$0xff]   ;;  %vm940_vm3 = vcmask 1043456   ;;  %vm924_vm4 = vcmask 64512  }
  0xb8   : > { %1574 = vmatpush3.bf16.msra.mxu0 %v1798_v1  ;;  %1582 = vmatpush3.bf16.msra.mxu1 %v1802_v3  ;;  %v2476_v9 = vld [vmem:[%s2421_s1] sm:$0xff]  ;;  %v1517_v16 = vld [vmem:[#allocation20] ss:$0 sm:$0xff]  ;;  %v2494_v34 = vld [vmem:[#allocation14] ss:$0 sm:$0xff]  ;;  %s2672_s22 = sld [smem:[#allocation32_spill]] }
  0xb9   : > { %1575 = vmatprep.subr.bf16.mxu0 %v2171_v0  ;;  %1583 = vmatprep.subr.bf16.mxu1 %v2171_v0  ;;  %v813_v10 = vpack.c.bf16 %v2476_v9, %v2476_v9  ;;  %v1513_v11 = vld [vmem:[#allocation17] ss:$0 sm:$0xff]  ;;  %v2509_v59 = vld [vmem:[%s2616_s9 + $0x8] sm:$0xff]   ;;  %v2515_v60 = vld [vmem:[%s2616_s9] sm:$0xff]   ;;  %s1538_s5 = sshll.u32 %s2150_s20, 7  ;;  %s570_s15 = scalar_lea.vmem [#allocation21], %s1503_s13 }
  0xba   : > { %s1306_s16 = sshll.u32 %s570_s15, 4  ;;  %s2673_s29 = sld [smem:[#allocation39_spill]]  ;;  %s1307_s16 = int_to_ptr.vmem [resolvable:$true] %s1306_s16 }
  0xbb   : > { %s1292_s19 = scalar_lea.sflag [#allocation8], %s2415_s26  ;;  %s2062_s24 = scalar_lea.vmem %s1307_s16, 128 }
  0xbc   : > { %1576 = vmatpush3.bf16.msra.mxu0 %v1799_v2  ;;  %1584 = vmatpush3.bf16.msra.mxu1 %v1803_v5  ;;  %p2063_p2 = scmp.ne.s32.totalorder %s1307_s16, %s2062_s24  ;;  %s2173_s20 = smov [#allocation21]  }
  0xbd   : > { %1589 = vmatprep.subr.bf16.mxu0 %v2171_v0  ;;  %1597 = vmatprep.subr.bf16.mxu1 %v2171_v0  ;;  %s2066_s28 = sshll.u32 %s2173_s20, 4  ;;  %s2067_s28 = int_to_ptr.vmem [resolvable:$false] %s2066_s28 }
  0xbe   : > { %p2674_p5 = scmp.ne.s32.totalorder %s2672_s22, 0  ;;  %s2068_s13 = scalar_lea.vmem %s2067_s28, 256 }
  0xbf   : > { %1578 = vmatmul.mubr.msk.bf16.vlgmr.msra.gmra.mxu0 %vm616_vm1, %v596_v4  ;;  %1586 = vmatmul.mubr.msk.bf16.vlgmr.msra.gmra.mxu1 %vm616_vm1, %v596_v4  ;;  %p2069_p0 = scmp.lt.s32.totalorder %s1307_s16, %s2067_s28  ;;  %p2070_p4 = scmp.lt.s32.totalorder %s2068_s13, %s2062_s24 }
  0xc0   : > { %1590 = vmatpush3.bf16.msra.mxu0 %v1798_v1  ;;  %1593 = vmatprep.mubr.msk.bf16.mxu0 %vm2172_vm0, %v2171_v0  ;;  %s1304_s1 = scalar_lea.hbm %s2673_s29, %s1538_s5  ;;  %p2064_p12 = pnand %p2063_p2, %p2674_p5 }
  0xc1   : > { %1591 = vmatprep.subr.bf16.mxu0 %v2171_v0  ;;  %1598 = vmatpush3.bf16.msra.mxu1 %v1802_v3  ;;  %p2071_p8 = por %p2070_p4, %p2069_p0 }
  0xc2   : > { %1599 = vmatprep.subr.bf16.mxu1 %v2171_v0  ;;  %1601 = vmatprep.mubr.msk.bf16.mxu1 %vm2172_vm0, %v2171_v0  ;;  %p2065_p7 = pneg %p2064_p12 }
  0xc4   : > { %1592 = vmatpush3.bf16.msra.mxu0 %v1799_v2  ;;  %p2072_p6 = pnand %p2071_p8, %p2065_p7 }
  0xc5   : > { %1605 = vmatprep.subr.bf16.mxu0 %v2171_v0  ;;  %1600 = vmatpush3.bf16.msra.mxu1 %v1803_v5 }
  0xc6   : > { %1613 = vmatprep.subr.bf16.mxu1 %v2171_v0 }
  0xc7   : > { %1594 = vmatmul.mubr.msk.bf16.vlgmr.msra.gmra.mxu0 %vm616_vm1, %v597_v6 }
  0xc8   : > { %1606 = vmatpush3.bf16.msra.mxu0 %v2462_v7  ;;  %1609 = vmatprep.mubr.msk.bf16.mxu0 %vm2172_vm0, %v2171_v0 }
  0xc9   : > { %1607 = vmatprep.subr.bf16.mxu0 %v2171_v0  ;;  %1602 = vmatmul.mubr.msk.bf16.vlgmr.msra.gmra.mxu1 %vm616_vm1, %v597_v6 }
  0xca   : > { %1615 = vmatprep.mubr.msk.bf16.mxu1 %vm2172_vm0, %v2171_v0 }
  0xcc   : > { %1608 = vmatpush3.bf16.msra.mxu0 %v2471_v8 }
  0xcd   : > { %1619 = vmatprep.subr.bf16.mxu0 %v2171_v0 }
  0xcf   : > { %1610 = vmatmul.mubr.msk.bf16.vlgmr.msra.gmra.mxu0 %vm616_vm1, %v813_v10 }
  0xd0   : > { %1621 = vmatprep.mubr.msk.bf16.mxu0 %vm2172_vm0, %v2171_v0 }
 0x17f   : > { %v654_v12 = vpop.f32.mrf.mxu0  ;;  %v715_v18 = vpop.f32.mrf.mxu1 }
 0x180   : > { %v655_v13 = vadd.f32 %v1513_v11, %v654_v12  ;;  %v716_v20 = vadd.f32 %v1517_v16, %v715_v18 }
 0x181   : > { %v1579_v14 = vpop.f32.mrf.mxu0  ;;  %v1587_v21 = vpop.f32.mrf.mxu1 }
 0x182   : > { %v660_v15 = vpack.c.bf16 %v655_v13, %v655_v13  ;;  %v721_v23 = vpack.c.bf16 %v716_v20, %v716_v20 }
 0x183   : > { %v657_v17 = vpop.f32.mrf.mxu0  ;;  %v718_v25 = vpop.f32.mrf.mxu1 }
 0x184   : > { %662 = vst.msk [vmem:[#allocation2] sm:$0xf] %vm661_vm2, %v660_v15  ;;  %722 = vst.msk [vmem:[#allocation3] sm:$0xf] %vm661_vm2, %v721_v23 }
 0x185   : > { %v1580_v19 = vpop.f32.mrf.mxu0  ;;  %v1588_v28 = vpop.f32.mrf.mxu1 }
 0x187   : > { %v760_v22 = vpop.f32.mrf.mxu0 }
 0x188   : > { %v761_v24 = vadd.f32 %v1513_v11, %v760_v22 }
 0x189   : > { %v1595_v26 = vpop.f32.mrf.mxu0  ;;  %v802_v32 = vpop.f32.mrf.mxu1 }
 0x18a   : > { %v766_v27 = vpack.c.bf16 %v761_v24, %v761_v24  ;;  %v803_v35 = vadd.f32 %v1517_v16, %v802_v32 }
 0x18b   : > { %v763_v29 = vpop.f32.mrf.mxu0  ;;  %v811_v30 = vld [vmem:[#allocation2] sm:$0xf]  ;;  %v1603_v36 = vpop.f32.mrf.mxu1  ;;  %v812_v41 = vld [vmem:[#allocation3] sm:$0xf] }
 0x18c   : > { %767 = vst.msk [vmem:[#allocation4] sm:$0xf] %vm661_vm2, %v766_v27  ;;  %v882_v31 = vsel %vm616_vm1, %v811_v30, 0  ;;  %v808_v38 = vpack.c.bf16 %v803_v35, %v803_v35  ;;  %v942_v43 = vsel %vm940_vm3, %v812_v41, 0 }
 0x18d   : > { %v1596_v33 = vpop.f32.mrf.mxu0  ;;  %1614 = vmatpush3.bf16.xpose.msra.mxu1 %v882_v31  ;;  %v805_v40 = vpop.f32.mrf.mxu1  ;;  %1620 = vmatpush3.bf16.msra.mxu0 %v942_v43 }
 0x18e   : > { %1625 = vmatprep.subr.bf16.mxu1 %v2171_v0  ;;  %809 = vst.msk [vmem:[#allocation5] sm:$0xf] %vm661_vm2, %v808_v38  ;;  %1633 = vmatprep.subr.bf16.mxu0 %v2171_v0 }
 0x18f   : > { %v870_v37 = vpop.f32.mrf.mxu0  ;;  %v1604_v45 = vpop.f32.mrf.mxu1 }
 0x190   : > { %v871_v39 = vadd.f32 %v2494_v34, %v870_v37 }
 0x191   : > { %v1611_v42 = vpop.f32.mrf.mxu0 }
 0x192   : > { %v876_v44 = vmul.f32 0.17677669, %v871_v39 }
 0x193   : > { %v873_v46 = vpop.f32.mrf.mxu0  ;;  %v1070_v3 = vld [vmem:[#allocation4] sm:$0xf] }
 0x194   : > { %v877_v47 = vpack.c.bf16 %v876_v44, %v876_v44  ;;  %v1122_v6 = vsel %vm616_vm1, %v1070_v3, 0 }
 0x195   : > { %v1612_v48 = vpop.f32.mrf.mxu0  ;;  %v1071_v37 = vld [vmem:[#allocation5] sm:$0xf] }
 0x196   : > { %1616 = vmatmul.mubr.msk.bf16.vlgmr.msra.gmra.mxu1 %vm616_vm1, %v877_v47  ;;  %v1180_v39 = vsel %vm940_vm3, %v1071_v37, 0 }
 0x197   : > { %1629 = vmatprep.mubr.msk.bf16.mxu1 %vm2172_vm0, %v2171_v0  ;;  %1626 = vmatpush3.bf16.msra.mxu1 %v2509_v59 }
 0x198   : > { %1627 = vmatprep.subr.bf16.mxu1 %v2171_v0 }
 0x19b   : > { %1628 = vmatpush3.bf16.msra.mxu1 %v2515_v60 }
 0x19c   : > { %1641 = vmatprep.subr.bf16.mxu1 %v2171_v0 }
 0x256   : > { %v918_v49 = vpop.f32.mrf.mxu1 }
 0x257   : > { %v925_v50 = vsel %vm924_vm4, %v918_v49, -inf }
 0x258   : > { %926 = vmax.xlane.f32.xlu0 %v925_v50  ;;  %v1617_v51 = vpop.f32.mrf.mxu1 }
 0x25a   : > { %v921_v52 = vpop.f32.mrf.mxu1 }
 0x25c   : > { %v1618_v53 = vpop.f32.mrf.mxu1 }
 0x2e1   : > { %v927_v54 = vpop.xlane.xlu0 %926 }
 0x2e2   : > { %v928_v55 = vsub.f32 %v918_v49, %v927_v54 }
 0x2e4   : > { %v929_v56 = vmul.f32 1.442695, %v928_v55 }
 0x2e6   : > { %1806 = vpow2.f32 %v929_v56 }
 0x2f3   : > { %v1807_v57 = vpop.eup %1806 }
 0x2f4   : > { %v931_v58 = vsel %vm924_vm4, %v1807_v57, 0.0 }
 0x2f5   : > { %932 = vadd.xlane.f32.xlu0 %v931_v58 }
 0x37e   : > { %v933_v61 = vpop.xlane.xlu0 %932 }
 0x37f   : > { %1808 = vrcp.f32 %v933_v61 }
 0x38c   : > { %v1809_v62 = vpop.eup %1808 }
 0x38d   : > { %v935_v63 = vmul.f32 %v1809_v62, %v1807_v57 }
 0x38f   : > { %v936_v1 = vpack.c.bf16 %v935_v63, %v935_v63 }
 0x391   : > { %1622 = vmatmul.mubr.msk.bf16.vlgmr.msra.gmra.mxu0 %vm924_vm4, %v936_v1 }
 0x392   : > { %1634 = vmatpush3.bf16.msra.mxu0 %v2462_v7  ;;  %1637 = vmatprep.mubr.msk.bf16.mxu0 %vm2172_vm0, %v2171_v0 }
 0x393   : > { %1635 = vmatprep.subr.bf16.mxu0 %v2171_v0 }
 0x396   : > { %1636 = vmatpush3.bf16.msra.mxu0 %v2471_v8  ;;  %v2535_v8 = vld [vmem:[%s2617_s10] ss:$0 sm:$0xff] }
 0x397   : > { %1647 = vmatprep.subr.bf16.mxu0 %v2171_v0 }
 0x451   : > { %v978_v2 = vpop.f32.mrf.mxu0 }
 0x452   : > { %v984_v4 = vpack.c.bf16 %v978_v2, %v978_v2 }
 0x453   : > { %v1623_v5 = vpop.f32.mrf.mxu0 }
 0x454   : > { %1630 = vmatmul.mubr.msk.bf16.vlgmr.msra.gmra.mxu1 %vm616_vm1, %v984_v4 }
 0x455   : > { %1642 = vmatpush3.bf16.xpose.msra.mxu1 %v1122_v6  ;;  %v981_v10 = vpop.f32.mrf.mxu0  ;;  %1643 = vmatprep.mubr.msk.bf16.mxu1 %vm2172_vm0, %v2171_v0 }
 0x456   : > { %1653 = vmatprep.subr.bf16.mxu1 %v2171_v0 }
 0x457   : > { %v1624_v7 = vpop.f32.mrf.mxu0 }
 0x514   : > { %v1040_v11 = vpop.f32.mrf.mxu1 }
 0x515   : > { %v1041_v12 = vadd.f32 %v2535_v8, %v1040_v11 }
 0x516   : > { %v1631_v13 = vpop.f32.mrf.mxu1 }
 0x517   : > { %v1046_v14 = vsel %vm616_vm1, %v1041_v12, 0.0  ;;  %v1049_v15 = vmul.f32 %v1041_v12, %v1041_v12 }
 0x518   : > { %1047 = vadd.xlane.f32.xlu1 %v1046_v14  ;;  %v1043_v16 = vpop.f32.mrf.mxu1 }
 0x519   : > { %v1050_v18 = vsel %vm616_vm1, %v1049_v15, 0.0 }
 0x51a   : > { %v1632_v17 = vpop.f32.mrf.mxu1 }
 0x51c   : > { %1051 = vadd.xlane.f32.xlu1 %v1050_v18 }
 0x5a1   : > { %v1048_v19 = vpop.xlane.xlu1 %1047 }
 0x5a2   : > { %v1053_v20 = vmul.f32 0.03125, %v1048_v19 }
 0x5a4   : > { %v1054_v21 = vmul.f32 %v1053_v20, %v1048_v19  ;;  %v1065_v32 = vsub.f32 %v1041_v12, %v1053_v20 }
 0x5a5   : > { %v1052_v22 = vpop.xlane.xlu1 %1051 }
 0x5a6   : > { %v1055_v23 = vsub.f32 %v1052_v22, %v1054_v21 }
 0x5a8   : > { %v1056_v24 = vmax.f32 %v1055_v23, 0.0 }
 0x5aa   : > { %v1057_v25 = vmul.f32 0.032258064, %v1056_v24 }
 0x5ac   : > { %1810 = vrsqrt.f32 %v1057_v25  ;;  %vm1060_vm5 = vcmp.eq.f32.partialorder %v1057_v25, inf  ;;  %v1063_v28 = vand.u32 2147483648, %v1057_v25  ;;  %vm1062_vm6 = vcmp.eq.f32.partialorder %v1057_v25, 0.0 }
 0x5b9   : > { %v1811_v26 = vpop.eup %1810 }
 0x5ba   : > { %v1059_v27 = vmul.f32 %v1811_v26, %v1057_v25 }
 0x5bc   : > { %v1061_v29 = vsel %vm1060_vm5, %v1057_v25, %v1059_v27 }
 0x5bd   : > { %v1064_v30 = vsel %vm1062_vm6, %v1063_v28, %v1061_v29 }
 0x5be   : > { %v1066_v31 = vadd.f32 1e-06, %v1064_v30 }
 0x5c0   : > { %1812 = vrcp.f32 %v1066_v31 }
 0x5cd   : > { %v1813_v33 = vpop.eup %1812 }
 0x5ce   : > { %v1068_v35 = vmul.f32 %v1813_v33, %v1065_v32 }
 0x5d0   : > { %v2541_v36 = vadd.f32 %v1068_v35, %v2476_v9 }
 0x5d2   : > { %v1072_v38 = vpack.c.bf16 %v2541_v36, %v2541_v36 }
 0x5d4   : > { %1638 = vmatmul.mubr.msk.bf16.vlgmr.msra.gmra.mxu0 %vm616_vm1, %v1072_v38 }
 0x5d5   : > { %1648 = vmatpush3.bf16.msra.mxu0 %v1180_v39  ;;  %1649 = vmatprep.mubr.msk.bf16.mxu0 %vm2172_vm0, %v2171_v0 }
 0x694   : > { %v1110_v40 = vpop.f32.mrf.mxu0 }
 0x695   : > { %v1111_v41 = vadd.f32 %v2494_v34, %v1110_v40 }
 0x696   : > { %v1639_v42 = vpop.f32.mrf.mxu0 }
 0x697   : > { %v1116_v43 = vmul.f32 0.17677669, %v1111_v41 }
 0x698   : > { %v1113_v44 = vpop.f32.mrf.mxu0 }
 0x699   : > { %v1117_v9 = vpack.c.bf16 %v1116_v43, %v1116_v43 }
 0x69a   : > { %v1640_v45 = vpop.f32.mrf.mxu0 }
 0x69b   : > { %1644 = vmatmul.mubr.msk.bf16.vlgmr.msra.gmra.mxu1 %vm616_vm1, %v1117_v9 }
 0x69c   : > { %1654 = vmatpush3.bf16.msra.mxu1 %v2509_v59  ;;  %1657 = vmatprep.mubr.msk.bf16.mxu1 %vm2172_vm0, %v2171_v0 }
 0x69d   : > { %1655 = vmatprep.subr.bf16.mxu1 %v2171_v0 }
 0x6a0   : > { %1656 = vmatpush3.bf16.msra.mxu1 %v2515_v60 }
 0x75b   : > { %v1158_v46 = vpop.f32.mrf.mxu1 }
 0x75c   : > { %v1164_v47 = vsel %vm924_vm4, %v1158_v46, -inf }
 0x75d   : > { %1165 = vmax.xlane.f32.xlu0 %v1164_v47  ;;  %v1645_v34 = vpop.f32.mrf.mxu1 }
 0x75f   : > { %v1161_v48 = vpop.f32.mrf.mxu1 }
 0x761   : > { %v1646_v49 = vpop.f32.mrf.mxu1 }
 0x7e6   : > { %v1166_v50 = vpop.xlane.xlu0 %1165 }
 0x7e7   : > { %v1167_v51 = vsub.f32 %v1158_v46, %v1166_v50 }
 0x7e9   : > { %v1168_v52 = vmul.f32 1.442695, %v1167_v51 }
 0x7eb   : > { %1814 = vpow2.f32 %v1168_v52 }
 0x7f8   : > { %v1815_v53 = vpop.eup %1814 }
 0x7f9   : > { %v1170_v54 = vsel %vm924_vm4, %v1815_v53, 0.0 }
 0x7fa   : > { %1171 = vadd.xlane.f32.xlu1 %v1170_v54 }
 0x883   : > { %v1172_v55 = vpop.xlane.xlu1 %1171 }
 0x884   : > { %1816 = vrcp.f32 %v1172_v55 }
 0x891   : > { %v1817_v0 = vpop.eup %1816 }
 0x892   : > { %v1174_v56 = vmul.f32 %v1817_v0, %v1815_v53 }
 0x894   : > { %v1175_v57 = vpack.c.bf16 %v1174_v56, %v1174_v56 }
 0x896   : > { %1650 = vmatmul.mubr.msk.bf16.vlgmr.msra.gmra.mxu0 %vm924_vm4, %v1175_v57 }
 0x956   : > { %v1216_v58 = vpop.f32.mrf.mxu0 }
 0x957   : > { %v1222_v59 = vpack.c.bf16 %v1216_v58, %v1216_v58 }
 0x958   : > { %v1651_v60 = vpop.f32.mrf.mxu0 }
 0x959   : > { %1658 = vmatmul.mubr.msk.bf16.vlgmr.msra.gmra.mxu1 %vm616_vm1, %v1222_v59 }
 0x95a   : > { %v1219_v61 = vpop.f32.mrf.mxu0 }
 0x95c   : > { %v1652_v62 = vpop.f32.mrf.mxu0 }
 0xa19   : > { %v1260_v63 = vpop.f32.mrf.mxu1 }
 0xa1a   : > { %v1261_v1 = vadd.f32 %v2535_v8, %v1260_v63 }
 0xa1b   : > { %v1659_v2 = vpop.f32.mrf.mxu1 }
 0xa1c   : > { %v1266_v3 = vsel %vm616_vm1, %v1261_v1, 0.0  ;;  %v1269_v4 = vmul.f32 %v1261_v1, %v1261_v1 }
 0xa1d   : > { %1267 = vadd.xlane.f32.xlu0 %v1266_v3  ;;  %v1263_v5 = vpop.f32.mrf.mxu1 }
 0xa1e   : > { %v1270_v6 = vsel %vm616_vm1, %v1269_v4, 0.0 }
 0xa1f   : > { %1271 = vadd.xlane.f32.xlu1 %v1270_v6  ;;  %v1660_v10 = vpop.f32.mrf.mxu1 }
 0xaa6   : > { %v1268_v7 = vpop.xlane.xlu0 %1267 }
 0xaa7   : > { %v1273_v11 = vmul.f32 0.03125, %v1268_v7 }
 0xaa8   : > { %v1272_v13 = vpop.xlane.xlu1 %1271 }
 0xaa9   : > { %v1274_v12 = vmul.f32 %v1273_v11, %v1268_v7  ;;  %v1285_v22 = vsub.f32 %v1261_v1, %v1273_v11 }
 0xaab   : > { %v1275_v14 = vsub.f32 %v1272_v13, %v1274_v12 }
 0xaad   : > { %v1276_v15 = vmax.f32 %v1275_v14, 0.0 }
 0xaaf   : > { %v1277_v16 = vmul.f32 0.032258064, %v1276_v15 }
 0xab1   : > { %1818 = vrsqrt.f32 %v1277_v16  ;;  %vm1280_vm7 = vcmp.eq.f32.partialorder %v1277_v16, inf  ;;  %v1283_v18 = vand.u32 2147483648, %v1277_v16  ;;  %vm1282_vm8 = vcmp.eq.f32.partialorder %v1277_v16, 0.0 }
 0xabe   : > { %v1819_v8 = vpop.eup %1818 }
 0xabf   : > { %v1279_v17 = vmul.f32 %v1819_v8, %v1277_v16 }
 0xac1   : > { %v1281_v19 = vsel %vm1280_vm7, %v1277_v16, %v1279_v17 }
 0xac2   : > { %v1284_v20 = vsel %vm1282_vm8, %v1283_v18, %v1281_v19 }
 0xac3   : > { %v1286_v21 = vadd.f32 1e-06, %v1284_v20 }
 0xac5   : > { %1820 = vrcp.f32 %v1286_v21 }
 0xad2   : > { %v1821_v23 = vpop.eup %1820 }
 0xad3   : > { %v1288_v24 = vmul.f32 %v1821_v23, %v1285_v22 }
 0xad5   : > { %v1289_v25 = vadd.f32 %v1288_v24, %v2541_v36 }
 0xad7   : > { %1290 = vst.msk [vmem:[%s570_s15] sm:$0xff] %vm616_vm1, %v1289_v25 }
 0xad8   : > { %2075 = shalt.err (!%p2072_p6)
}
 0xad9   : > { %s2076_s11 = scalar_lea.hbm %s1304_s1, 128  ;;  %s2080_s23 = scalar_lea.hbm %s2673_s29, 256 }
 0xada   : > { %p2077_p13 = scmp.ne.s32.totalorder %s1304_s1, %s2076_s11  ;;  %p2081_p3 = scmp.lt.s32.totalorder %s1304_s1, %s2673_s29 }
 0xadb   : > { %p2082_p11 = scmp.lt.s32.totalorder %s2080_s23, %s2076_s11 }
 0xadc   : > { %p2078_p9 = pnand %p2077_p13, %p2674_p5 }
 0xadd   : > { %p2083_p10 = por %p2082_p11, %p2081_p3 }
 0xade   : > { %p2079_p1 = pneg %p2078_p9 }
 0xae0   : > { %p2084_p2 = pnand %p2083_p10, %p2079_p1 }
 0xae2   : > { %2087 = shalt.err (!%p2084_p2)
}
 0xae3   : > { %1691 = dma.vmem_to_hbm [thread:$0]  (%p2674_p5), %s1307_s16, 128, %s1304_s1, %s1292_s19  }
 0xae4 PF: > { %s2675_s25 = sld [smem:[#allocation28_spill]] }
 0xae5   : > { %s2676_s3 = sld [smem:[#allocation34_spill]] }
 0xae6   : > { %s2677_s30 = sld [smem:[#allocation30_spill]] }
 0xaea   : > { %s1318_s5 = sand.u32 1, %s2675_s25  }
 0xaeb   : > { %p2678_p12 = scmp.ne.s32.totalorder %s2676_s3, 0  ;;  %s1319_s15 = scalar_lea.sflag [#allocation8], %s1318_s5 }
 0xaec   : > { %p2679_p7 = scmp.ge.s32.totalorder %s2677_s30, 2 }
 0xaee   : > { %p1723_p0 = pnand %p2679_p7, %p2678_p12 }
 0xaf0   : > { %p1724_p4 = pneg %p1723_p0 }
 0xaf2   : > { %2133 = dma.done.wait (%p1724_p4), %s1319_s15, 128  }
 0xaf3   : > { %2135 = vsyncadd (%p1724_p4), %s1319_s15, 4294967168  ;;  %s33_s22 = sadd.s32 1, %s2677_s30   ;;  %s2680_s12 = sld [smem:[#allocation29_spill]] }
 0xaf4   : > { %p30_p8 = scmp.ge.s32.totalorder %s33_s22, 4   ;;  %s2681_s19 = sld [smem:[#allocation33_spill]] }
 0xaf5   : > { %s2682_s16 = sld [smem:[#allocation31_spill]]  ;;  %s2683_s17 = smov %s2142_s18 }
 0xaf6   : > { %s2685_s20 = smov %s2154_s21 }
 0xaf7   :  { %32 = sbr.rel (!%p30_p8) target bundleno = 17 (0x11), region = 161 }
 0xaf9   : > { %s2684_s18 = smov %s2680_s12 }
 0xafb   : > { %s2686_s21 = smov %s2682_s16 }
 0xafc   :  { %1324 = vsyncpa [#allocation7], 1 }
 0xafd   :  { %1326 = vsyncpa [#allocation7 + $0x1], 1 }
 0xafe   :  { %1327 = vsyncpa [#allocation10], 1 }
 0xaff   :  { %1329 = vsyncpa [#allocation10 + $0x1], 1 }
 0xb00   :  { %1330 = vsyncpa [#allocation13], 1 }
 0xb01   :  { %1331 = vsyncpa [#allocation16], 1 }
 0xb02   :  { %1332 = vsyncpa [#allocation19], 1 }
 0xb03   :  { %1333 = vsyncpa [#allocation8], 1 }
 0xb04   :  { %1335 = vsyncpa [#allocation8 + $0x1], 1 }

// kernel: tpu_custom_call.1
= control target key start
LH: loop header
LB: loop body
LE: loop exit
PB: predicated region body
PF: predicated region fallthrough
CT: control target
= control target key end

     0   :  { %s2607_s0 = inlined_call_operand.hbm [shape: f32[2,8,32], index: 0, kind: input, shape index: {}]   ;;  %s2608_s1 = inlined_call_operand.hbm [shape: bf16[2,8,32], index: 1, kind: input, shape index: {}]   ;;  %s2609_s2 = inlined_call_operand.hbm [shape: bf16[2,8,32], index: 2, kind: input, shape index: {}]   ;;  %s2610_s3 = inlined_call_operand.hbm [shape: bf16[32,32], index: 3, kind: input, shape index: {}]   ;;  %s2611_s4 = inlined_call_operand.hbm [shape: f32[1,32], index: 4, kind: input, shape index: {}]   ;;  %s2612_s5 = inlined_call_operand.hbm [shape: bf16[32,32], index: 5, kind: input, shape index: {}]   ;;  %s2613_s6 = inlined_call_operand.hbm [shape: f32[1,32], index: 6, kind: input, shape index: {}]   ;;  %s2614_s7 = inlined_call_operand.hbm [shape: bf16[32,32], index: 7, kind: input, shape index: {}]   ;;  %s2615_s8 = inlined_call_operand.hbm [shape: f32[1,32], index: 8, kind: input, shape index: {}]   ;;  %s2616_s9 = inlined_call_operand.vmem [shape: bf16[32,32], index: 9, kind: input, shape index: {}]   ;;  %s2617_s10 = inlined_call_operand.vmem [shape: f32[1,32], index: 10, kind: input, shape index: {}]   ;;  %s2618_s11 = inlined_call_operand.hbm [shape: f32[2,8,32], index: 11, kind: output, shape index: {}]  }
   0x1   :  { %2636 = sst [smem:[#allocation35_spill]] %s2608_s1 }
   0x2   :  { %2637 = sst [smem:[#allocation36_spill]] %s2610_s3 }
   0x3   :  { %2638 = sst [smem:[#allocation37_spill]] %s2612_s5 }
   0x4   :  { %2639 = sst [smem:[#allocation38_spill]] %s2614_s7 }
   0x5   :  { %2640 = sst [smem:[#allocation39_spill]] %s2618_s11 }
   0x6   :  { %16 = vsyncpa [#allocation7], 0 }
   0x7   :  { %18 = vsyncpa [#allocation7 + $0x1], 0 }
   0x8   :  { %19 = vsyncpa [#allocation10], 0 }
   0x9   :  { %21 = vsyncpa [#allocation10 + $0x1], 0 }
   0xa   :  { %22 = vsyncpa [#allocation13], 0 }
   0xb   :  { %23 = vsyncpa [#allocation16], 0 }
   0xc   :  { %24 = vsyncpa [#allocation19], 0 }
   0xd   :  { %25 = vsyncpa [#allocation8], 0 }
   0xe   :  { %27 = vsyncpa [#allocation8 + $0x1], 0  ;;  %s2234_s17 = smov 0   ;;  %s2236_s18 = smov 0  }
   0xf   :  { %s2238_s19 = smov 0   ;;  %s2240_s20 = smov 0  }
  0x10   :  { %s2242_s21 = smov 0   ;;  %s2244_s22 = smov 0  }
  0x11 LB: > { %2641 = sst [smem:[#allocation28_spill]] %s2138_s17  ;;  %s2265_s23 = sadd.s32 4294967295, %s2158_s22   ;;  %s2158_s22 = sphi %s2244_s22, %s33_s22   ;;  %s2154_s21 = sphi %s2242_s21, %s2686_s21   ;;  %s2150_s20 = sphi %s2240_s20, %s2685_s20   ;;  %s2146_s19 = sphi %s2238_s19, %s2681_s19   ;;  %s2142_s18 = sphi %s2236_s18, %s2684_s18   ;;  %s2138_s17 = sphi %s2234_s17, %s2683_s17  }
  0x12   : > { %2642 = sst [smem:[#allocation29_spill]] %s2146_s19  ;;  %p1488_p0 = scmp.ge.s32.totalorder %s2158_s22, 1 }
  0x13   : > { %2643 = sst [smem:[#allocation30_spill]] %s2158_s22  ;;  %p2619_p1 = scmp.eq.s32.totalorder %s2265_s23, 0 }
  0x14   : > { %p326_p2 = scmp.lt.s32.totalorder %s2158_s22, 3  ;;  %s2160_s25 = smov [#allocation12]  }
  0x15   : > { %s338_s26 = sshll.u32 %s2160_s25, 4  ;;  %s2161_s28 = smov [#allocation15]   ;;  %s339_s26 = int_to_ptr.vmem [resolvable:$true] %s338_s26 }
  0x16   : > { %p2270_p3 = pnand %p1488_p0, %p326_p2  ;;  %s362_s29 = sshll.u32 %s2161_s28, 4  ;;  %s363_s29 = int_to_ptr.vmem [resolvable:$true] %s362_s29 }
  0x17   : > { %s2162_s30 = smov [#allocation18]   ;;  %s1833_s14 = scalar_lea.vmem %s339_s26, 256 }
  0x18   : > { %s2644_s24 = scalar_select %p2270_p3, 1, 0 }
  0x19   : > { %p1693_p4 = pneg %p2270_p3  ;;  %s386_s12 = sshll.u32 %s2162_s30, 4  ;;  %s387_s12 = int_to_ptr.vmem [resolvable:$true] %s386_s12 }
  0x1a   : > { %p1834_p8 = scmp.ne.s32.totalorder %s339_s26, %s1833_s14  ;;  %p1841_p11 = scmp.lt.s32.totalorder %s339_s26, %s339_s26 }
  0x1b   : > { %p2279_p6 = pnand %p1693_p4, %p2619_p1  ;;  %p1842_p12 = scmp.lt.s32.totalorder %s1833_s14, %s1833_s14 }
  0x1d   : > { %p2285_p7 = pneg %p2279_p6  ;;  %p1843_p13 = por %p1842_p12, %p1841_p11 }
  0x1f   : > { %p1836_p9 = pnand %p1834_p8, %p2285_p7 }
  0x21   : > { %p1837_p10 = pneg %p1836_p9 }
  0x23   : > { %p1844_p0 = pnand %p1843_p13, %p1837_p10 }
  0x25   : > { %1847 = shalt.err (!%p1844_p0)
}
  0x26   : > { %s2163_s15 = smov 64   ;;  %s2164_s16 = smov 4  }
  0x27   : > { %s2647_s3 = sld [smem:[#allocation36_spill]]  ;;  %s1859_s30 = scalar_lea.vmem %s363_s29, 256 }
  0x28   : > { %p1860_p2 = scmp.ne.s32.totalorder %s363_s29, %s1859_s30  ;;  %p1867_p9 = scmp.lt.s32.totalorder %s363_s29, %s363_s29 }
  0x29   : > { %p1868_p5 = scmp.lt.s32.totalorder %s1859_s30, %s1859_s30 }
  0x2a   : > { %p1862_p4 = pnand %p1860_p2, %p2285_p7 }
  0x2b   : > { %p1869_p1 = por %p1868_p5, %p1867_p9 }
  0x2c   : > { %p1863_p8 = pneg %p1862_p4 }
  0x2d   : > { %1696 = dma.hbm_to_vmem [thread:$0]  (!%p2279_p6), %s2647_s3, 256, %s339_s26, [#allocation13], %s2163_s15, %s2163_s15, %s2164_s16  }
  0x2e   : > { %p1870_p11 = pnand %p1869_p1, %p1863_p8 }
  0x30   : > { %1873 = shalt.err (!%p1870_p11)
}
  0x31   : > { %s2648_s5 = sld [smem:[#allocation37_spill]]  ;;  %s1885_s25 = scalar_lea.vmem %s387_s12, 256 }
  0x32   : > { %p1886_p10 = scmp.ne.s32.totalorder %s387_s12, %s1885_s25  ;;  %p1893_p0 = scmp.lt.s32.totalorder %s387_s12, %s387_s12 }
  0x33   : > { %p1894_p2 = scmp.lt.s32.totalorder %s1885_s25, %s1885_s25 }
  0x34   : > { %p1888_p12 = pnand %p1886_p10, %p2285_p7 }
  0x35   : > { %p1895_p4 = por %p1894_p2, %p1893_p0 }
  0x36   : > { %p1889_p13 = pneg %p1888_p12 }
  0x37   : > { %1702 = dma.hbm_to_vmem [thread:$0]  (!%p2279_p6), %s2648_s5, 256, %s363_s29, [#allocation16], %s2163_s15, %s2163_s15, %s2164_s16  }
  0x38   : > { %p1896_p3 = pnand %p1895_p4, %p1889_p13 }
  0x3a   : > { %1899 = shalt.err (!%p1896_p3)
}
  0x3b   : > { %s2649_s7 = sld [smem:[#allocation38_spill]]  ;;  %s1487_s11 = sadd.s32 4294967294, %s2158_s22  }
  0x3c   : > { %s45_s29 = sadd.s32 1, %s2154_s21  ;;  %s54_s30 = sadd.s32 1, %s2146_s19 }
  0x3d   : > { %p47_p1 = scmp.ge.s32.totalorder %s45_s29, 2  ;;  %p61_p3 = scmp.ne.s32.totalorder %s2146_s19, %s2142_s18 }
  0x3e   : > { %p62_p5 = scmp.eq.s32.totalorder %s2158_s22, 0  ;;  %p67_p8 = scmp.ne.s32.totalorder %s2142_s18, %s2138_s17 }
  0x3f   : > { %s2688_s29 = smov (%p47_p1, %s45_s29), 0  ;;  %p2651_p11 = scmp.eq.s32.totalorder %s2265_s23, 0 }
  0x40   : > { %2650 = sst [smem:[#allocation31_spill]] %s2688_s29  ;;  %p63_p9 = por %p62_p5, %p61_p3 }
  0x41   : > { %1708 = dma.hbm_to_vmem [thread:$0]  (!%p2279_p6), %s2649_s7, 256, %s387_s12, [#allocation19], %s2163_s15, %s2163_s15, %s2164_s16  }
  0x42   : > { %p2322_p10 = por %p2651_p11, %p67_p8  ;;  %s49_s12 = ssub.s32 %s2154_s21, %s2688_s29 }
  0x43   : > { %p313_p12 = scmp.eq.s32.totalorder %s2265_s23, 1  ;;  %p52_p13 = scmp.eq.s32.totalorder %s49_s12, 0 }
  0x44   : > { %s2652_s14 = scalar_select %p2322_p10, 1, 0 }
  0x45   : > { %p319_p0 = scmp.eq.s32.totalorder %s1487_s11, 1  ;;  %p2329_p2 = por %p313_p12, %p61_p3 }
  0x46   : > { %p1732_p4 = scmp.lt.s32.totalorder %s2158_s22, 2  ;;  %s2342_s26 = sand.u32 1, %s2146_s19  }
  0x47   : > { %s2653_s15 = scalar_select %p2329_p2, 1, 0 }
  0x48   : > { %s2335_s16 = scalar_select %p52_p13, %s2146_s19, %s54_s30  }
  0x49   : > { %2654 = sst [smem:[#allocation32_spill]] %s2653_s15  ;;  %p2337_p1 = por %p319_p0, %p67_p8 }
  0x4a   : > { %2655 = sst [smem:[#allocation33_spill]] %s2335_s16  ;;  %p2344_p5 = pnand %p1732_p4, %p63_p9 }
  0x4b   : > { %s2656_s25 = scalar_select %p2337_p1, 1, 0 }
  0x4c   : > { %s2658_s28 = scalar_select %p2344_p5, 1, 0 }
  0x4d   : > { %2657 = sst [smem:[#allocation34_spill]] %s2656_s25  ;;  %s436_s11 = sand.u32 1, %s2158_s22  }
  0x4e   : > { %s2628_s12 = sshll.u32 %s2342_s26, 2  ;;  %s1499_s3 = sshll.u32 %s2154_s21, 6 }
  0x4f   : > { %s440_s30 = scalar_lea.vmem [#allocation9], %s2628_s12  ;;  %s2659_s1 = sld [smem:[#allocation35_spill]] }
  0x50   : > { %s447_s5 = sshll.u32 %s440_s30, 4  ;;  %s2356_s19 = scalar_lea.sflag [#allocation10], %s436_s11  ;;  %s448_s5 = int_to_ptr.vmem [resolvable:$true] %s447_s5 }
  0x51   : > { %p2631_p3 = pneg %p2344_p5  ;;  %s1913_s25 = scalar_lea.vmem %s448_s5, 64 }
  0x52   : > { %p1914_p8 = scmp.ne.s32.totalorder %s448_s5, %s1913_s25  ;;  %s2165_s22 = smov [#allocation9]  }
  0x53   : > { %s1918_s17 = sshll.u32 %s2165_s22, 4  ;;  %s1919_s17 = int_to_ptr.vmem [resolvable:$false] %s1918_s17 }
  0x54   : > { %p1916_p9 = pnand %p1914_p8, %p2631_p3  ;;  %s1920_s12 = scalar_lea.vmem %s1919_s17, 128 }
  0x55   : > { %s445_s16 = scalar_lea.hbm %s2659_s1, %s1499_s3  ;;  %p1921_p12 = scmp.lt.s32.totalorder %s448_s5, %s1919_s17 }
  0x56   : > { %p1917_p11 = pneg %p1916_p9  ;;  %p1922_p13 = scmp.lt.s32.totalorder %s1920_s12, %s1913_s25 }
  0x58   : > { %p1923_p0 = por %p1922_p13, %p1921_p12 }
  0x5a   : > { %p1924_p4 = pnand %p1923_p0, %p1917_p11 }
  0x5c   : > { %1927 = shalt.err (!%p1924_p4)
}
  0x5d   : > { %1718 = dma.hbm_to_vmem [thread:$0]  (!%p2344_p5), %s445_s16, 64, %s448_s5, %s2356_s19  }
  0x5e   : > { %s2369_s11 = scalar_lea.hbm %s2609_s2, %s1499_s3  ;;  %s2166_s30 = smov [#allocation14]  }
  0x5f   : > { %s352_s1 = sshll.u32 %s2166_s30, 4  ;;  %s2167_s22 = smov [#allocation17]   ;;  %s353_s1 = int_to_ptr.vmem [resolvable:$true] %s352_s1 }
  0x60   : > { %s376_s15 = sshll.u32 %s2167_s22, 4  ;;  %s1939_s17 = scalar_lea.vmem %s353_s1, 16  ;;  %s377_s15 = int_to_ptr.vmem [resolvable:$true] %s376_s15 }
  0x61   : > { %p1940_p8 = scmp.ne.s32.totalorder %s353_s1, %s1939_s17  ;;  %s1946_s25 = scalar_lea.vmem %s353_s1, 32 }
  0x62   : > { %p1947_p12 = scmp.lt.s32.totalorder %s353_s1, %s353_s1  ;;  %p1948_p13 = scmp.lt.s32.totalorder %s1946_s25, %s1939_s17 }
  0x63   : > { %p1942_p9 = pnand %p1940_p8, %p2285_p7 }
  0x64   : > { %p1949_p0 = por %p1948_p13, %p1947_p12 }
  0x65   : > { %p1943_p11 = pneg %p1942_p9 }
  0x67   : > { %p1950_p4 = pnand %p1949_p0, %p1943_p11 }
  0x69   : > { %1953 = shalt.err (!%p1950_p4)
}
  0x6a   : > { %1699 = dma.hbm_to_vmem [thread:$0]  (!%p2279_p6), %s2611_s4, 16, %s353_s1, [#allocation13]  }
  0x6b   : > { %s1965_s16 = scalar_lea.vmem %s377_s15, 16  ;;  %s1972_s12 = scalar_lea.vmem %s377_s15, 32 }
  0x6c   : > { %p1966_p3 = scmp.ne.s32.totalorder %s377_s15, %s1965_s16  ;;  %p1973_p8 = scmp.lt.s32.totalorder %s377_s15, %s377_s15 }
  0x6d   : > { %p1974_p9 = scmp.lt.s32.totalorder %s1972_s12, %s1965_s16 }
  0x6e   : > { %p1968_p1 = pnand %p1966_p3, %p2285_p7 }
  0x6f   : > { %p1975_p10 = por %p1974_p9, %p1973_p8 }
  0x70   : > { %p1969_p2 = pneg %p1968_p1 }
  0x72   : > { %p1976_p5 = pnand %p1975_p10, %p1969_p2 }
  0x74   : > { %1979 = shalt.err (!%p1976_p5)
}
  0x75   : > { %1705 = dma.hbm_to_vmem [thread:$0]  (!%p2279_p6), %s2613_s6, 16, %s377_s15, [#allocation16]  }
  0x76   : > { %s2168_s1 = smov [#allocation20]   ;;  %s1496_s22 = sshll.u32 %s2342_s26, 3 }
  0x77   : > { %s400_s30 = sshll.u32 %s2168_s1, 4  ;;  %s401_s30 = int_to_ptr.vmem [resolvable:$true] %s400_s30 }
  0x78   : > { %s1991_s17 = scalar_lea.vmem %s401_s30, 16  ;;  %s1998_s25 = scalar_lea.vmem %s401_s30, 32 }
  0x79   : > { %p1992_p1 = scmp.ne.s32.totalorder %s401_s30, %s1991_s17  ;;  %p1999_p10 = scmp.lt.s32.totalorder %s401_s30, %s401_s30 }
  0x7a   : > { %p2000_p2 = scmp.lt.s32.totalorder %s1998_s25, %s1991_s17 }
  0x7b   : > { %p1994_p3 = pnand %p1992_p1, %p2285_p7 }
  0x7c   : > { %p2001_p5 = por %p2000_p2, %p1999_p10 }
  0x7d   : > { %p1995_p11 = pneg %p1994_p3 }
  0x7f   : > { %p2002_p12 = pnand %p2001_p5, %p1995_p11 }
  0x81   : > { %2005 = shalt.err (!%p2002_p12)
}
  0x82   : > { %1711 = dma.hbm_to_vmem [thread:$0]  (!%p2279_p6), %s2615_s8, 16, %s401_s30, [#allocation19]  }
  0x83   : > { %s1497_s15 = sshll.u32 %s2154_s21, 7  ;;  %s421_s16 = scalar_lea.vmem [#allocation6], %s1496_s22 }
  0x84   : > { %s429_s13 = sshll.u32 %s421_s16, 4  ;;  %s427_s29 = scalar_lea.hbm %s2607_s0, %s1497_s15  ;;  %s430_s13 = int_to_ptr.vmem [resolvable:$true] %s429_s13 }
  0x85   : > { %s418_s1 = scalar_lea.sflag [#allocation7], %s2342_s26  ;;  %s2019_s17 = scalar_lea.vmem %s430_s13, 128 }
  0x86   : > { %p2020_p7 = scmp.ne.s32.totalorder %s430_s13, %s2019_s17  ;;  %p2660_p13 = scmp.ne.s32.totalorder %s2658_s28, 0 }
  0x87   : > { %s2169_s27 = smov [#allocation6]  }
  0x88   : > { %p2661_p0 = pneg %p2660_p13  ;;  %s2024_s25 = sshll.u32 %s2169_s27, 4  ;;  %s2025_s25 = int_to_ptr.vmem [resolvable:$false] %s2024_s25 }
  0x89   : > { %s2026_s3 = scalar_lea.vmem %s2025_s25, 256  ;;  %p2027_p6 = scmp.lt.s32.totalorder %s430_s13, %s2025_s25 }
  0x8a   : > { %p2022_p4 = pnand %p2020_p7, %p2661_p0  ;;  %p2028_p9 = scmp.lt.s32.totalorder %s2026_s3, %s2019_s17 }
  0x8c   : > { %p2023_p8 = pneg %p2022_p4  ;;  %p2029_p1 = por %p2028_p9, %p2027_p6 }
  0x8e   : > { %p2030_p3 = pnand %p2029_p1, %p2023_p8 }
  0x90   : > { %2033 = shalt.err (!%p2030_p3)
}
  0x91   : > { %1715 = dma.hbm_to_vmem [thread:$0]  (!%p2660_p13), %s427_s29, 128, %s430_s13, %s418_s1  }
  0x92   : > { %s2662_s30 = sshll.u32 %s2342_s26, 2  ;;  %p2663_p10 = pmov %p2661_p0 }
  0x93   : > { %s458_s22 = scalar_lea.vmem [#allocation11], %s2662_s30  ;;  %s2170_s16 = smov [#allocation11]  }
  0x94   : > { %s465_s5 = sshll.u32 %s458_s22, 4  ;;  %s2052_s12 = sshll.u32 %s2170_s16, 4  ;;  %s466_s5 = int_to_ptr.vmem [resolvable:$true] %s465_s5  ;;  %s2053_s12 = int_to_ptr.vmem [resolvable:$false] %s2052_s12 }
  0x95   : > { %s2047_s15 = scalar_lea.vmem %s466_s5, 64  ;;  %s2054_s7 = scalar_lea.vmem %s2053_s12, 128 }
  0x96   : > { %p2048_p11 = scmp.ne.s32.totalorder %s466_s5, %s2047_s15  ;;  %p2055_p12 = scmp.lt.s32.totalorder %s466_s5, %s2053_s12 }
  0x97   : > { %p2056_p7 = scmp.lt.s32.totalorder %s2054_s7, %s2047_s15 }
  0x98   : > { %p2050_p2 = pnand %p2048_p11, %p2663_p10 }
  0x99   : > { %p2057_p0 = por %p2056_p7, %p2055_p12 }
  0x9a   : > { %p2051_p5 = pneg %p2050_p2 }
  0x9c   : > { %p2058_p4 = pnand %p2057_p0, %p2051_p5 }
  0x9e   : > { %2061 = shalt.err (!%p2058_p4)
}
  0x9f   : > { %1721 = dma.hbm_to_vmem [thread:$0]  (!%p2660_p13), %s2369_s11, 64, %s466_s5, %s2356_s19  }
  0xa0   : > { %p2664_p8 = scmp.ne.s32.totalorder %s2644_s24, 0 }
  0xa1   : > { %s2415_s26 = sand.u32 (!%p2664_p8), 1, %s2142_s18   ;;  %p2665_p6 = scmp.ne.s32.totalorder (!%p2664_p8), %s2652_s14, 0 }
  0xa2   : > { %474 = sbr.rel (%p2664_p8) target bundleno = 2788 (0xae4), region = 64  ;;  %s1503_s13 = sshll.u32 (!%p2664_p8), %s2415_s26, 3 }
  0xa3   : > { %s477_s29 = scalar_lea.sflag (!%p2664_p8), [#allocation7], %s2415_s26  ;;  %s2421_s1 = scalar_lea.vmem (!%p2664_p8), [#allocation6], %s1503_s13 }
  0xa7   : > { %2113 = dma.done.wait (%p2665_p6), %s477_s29, 128  }
  0xa8   : > { %2115 = vsyncadd (%p2665_p6), %s477_s29, 4294967168  ;;  %s485_s19 = sand.u32 1, %s2265_s23   ;;  %s1504_s24 = sshll.u32 %s2415_s26, 2 }
  0xa9   : > { %s486_s28 = scalar_lea.sflag [#allocation10], %s485_s19  ;;  %s489_s11 = scalar_lea.vmem [#allocation9], %s1504_s24 }
  0xaa   : > { %2117 = dma.done.wait (%p2665_p6), %s486_s28, 128  }
  0xab   : > { %2119 = vsyncadd (%p2665_p6), %s486_s28, 4294967168  ;;  %s2433_s17 = scalar_lea.vmem [#allocation11], %s1504_s24  ;;  %p2666_p13 = scmp.eq.s32.totalorder %s2265_s23, 0 }
  0xad   : > { %2121 = dma.done.wait (%p2666_p13), [#allocation13], 272   ;;  %p2667_p9 = pmov %p2666_p13 }
  0xaf   : > { %2123 = vsyncadd (%p2667_p9), [#allocation13], 4294967024  ;;  %p2668_p1 = pmov %p2667_p9 }
  0xb1   : > { %2125 = dma.done.wait (%p2668_p1), [#allocation16], 272   ;;  %p2669_p3 = pmov %p2668_p1 }
  0xb2   : > { %p2670_p11 = pmov %p2668_p1 }
  0xb3   : > { %2127 = vsyncadd (%p2669_p3), [#allocation16], 4294967024 }
  0xb4   : > { %2129 = dma.done.wait (%p2670_p11), [#allocation19], 272   ;;  %p2671_p10 = pmov %p2668_p1 }
  0xb5   : > { %v2171_v0 = vmov 0.0   ;;  %vm2172_vm0 = vmmov 0   ;;  %v1798_v1 = vld [vmem:[#allocation15 + $0x8] sm:$0xff]   ;;  %v1799_v2 = vld [vmem:[#allocation15] sm:$0xff]   ;;  %vm616_vm1 = vcmask 261120   ;;  %v1803_v5 = vld [vmem:[#allocation18] sm:$0xff]  }
  0xb6   : > { %2131 = vsyncadd (%p2671_p10), [#allocation19], 4294967024  ;;  %1573 = vmatprep.subr.bf16.mxu0 %v2171_v0  ;;  %1577 = vmatprep.mubr.msk.bf16.mxu0 %vm2172_vm0, %v2171_v0  ;;  %v1802_v3 = vld [vmem:[#allocation18 + $0x8] sm:$0xff]   ;;  %v597_v6 = vld [vmem:[%s2433_s17] sm:$0xf]  ;;  %vm661_vm2 = vcmask 257024  }
  0xb7   : > { %1581 = vmatprep.subr.bf16.mxu1 %v2171_v0  ;;  %1585 = vmatprep.mubr.msk.bf16.mxu1 %vm2172_vm0, %v2171_v0  ;;  %v596_v4 = vld [vmem:[%s489_s11] sm:$0xf]  ;;  %v2462_v7 = vld [vmem:[#allocation12 + $0x8] sm:$0xff]   ;;  %v2471_v8 = vld [vmem:[#allocation12] sm:$0xff]   ;;  %vm940_vm3 = vcmask 1043456   ;;  %vm924_vm4 = vcmask 64512  }
  0xb8   : > { %1574 = vmatpush3.bf16.msra.mxu0 %v1798_v1  ;;  %1582 = vmatpush3.bf16.msra.mxu1 %v1802_v3  ;;  %v2476_v9 = vld [vmem:[%s2421_s1] sm:$0xff]  ;;  %v1517_v16 = vld [vmem:[#allocation20] ss:$0 sm:$0xff]  ;;  %v2494_v34 = vld [vmem:[#allocation14] ss:$0 sm:$0xff]  ;;  %s2672_s22 = sld [smem:[#allocation32_spill]] }
  0xb9   : > { %1575 = vmatprep.subr.bf16.mxu0 %v2171_v0  ;;  %1583 = vmatprep.subr.bf16.mxu1 %v2171_v0  ;;  %v813_v10 = vpack.c.bf16 %v2476_v9, %v2476_v9  ;;  %v1513_v11 = vld [vmem:[#allocation17] ss:$0 sm:$0xff]  ;;  %v2509_v59 = vld [vmem:[%s2616_s9 + $0x8] sm:$0xff]   ;;  %v2515_v60 = vld [vmem:[%s2616_s9] sm:$0xff]   ;;  %s1538_s5 = sshll.u32 %s2150_s20, 7  ;;  %s570_s15 = scalar_lea.vmem [#allocation21], %s1503_s13 }
  0xba   : > { %s1306_s16 = sshll.u32 %s570_s15, 4  ;;  %s2673_s29 = sld [smem:[#allocation39_spill]]  ;;  %s1307_s16 = int_to_ptr.vmem [resolvable:$true] %s1306_s16 }
  0xbb   : > { %s1292_s19 = scalar_lea.sflag [#allocation8], %s2415_s26  ;;  %s2062_s24 = scalar_lea.vmem %s1307_s16, 128 }
  0xbc   : > { %1576 = vmatpush3.bf16.msra.mxu0 %v1799_v2  ;;  %1584 = vmatpush3.bf16.msra.mxu1 %v1803_v5  ;;  %p2063_p2 = scmp.ne.s32.totalorder %s1307_s16, %s2062_s24  ;;  %s2173_s20 = smov [#allocation21]  }
  0xbd   : > { %1589 = vmatprep.subr.bf16.mxu0 %v2171_v0  ;;  %1597 = vmatprep.subr.bf16.mxu1 %v2171_v0  ;;  %s2066_s28 = sshll.u32 %s2173_s20, 4  ;;  %s2067_s28 = int_to_ptr.vmem [resolvable:$false] %s2066_s28 }
  0xbe   : > { %p2674_p5 = scmp.ne.s32.totalorder %s2672_s22, 0  ;;  %s2068_s13 = scalar_lea.vmem %s2067_s28, 256 }
  0xbf   : > { %1578 = vmatmul.mubr.msk.bf16.vlgmr.msra.gmra.mxu0 %vm616_vm1, %v596_v4  ;;  %1586 = vmatmul.mubr.msk.bf16.vlgmr.msra.gmra.mxu1 %vm616_vm1, %v596_v4  ;;  %p2069_p0 = scmp.lt.s32.totalorder %s1307_s16, %s2067_s28  ;;  %p2070_p4 = scmp.lt.s32.totalorder %s2068_s13, %s2062_s24 }
  0xc0   : > { %1590 = vmatpush3.bf16.msra.mxu0 %v1798_v1  ;;  %1593 = vmatprep.mubr.msk.bf16.mxu0 %vm2172_vm0, %v2171_v0  ;;  %s1304_s1 = scalar_lea.hbm %s2673_s29, %s1538_s5  ;;  %p2064_p12 = pnand %p2063_p2, %p2674_p5 }
  0xc1   : > { %1591 = vmatprep.subr.bf16.mxu0 %v2171_v0  ;;  %1598 = vmatpush3.bf16.msra.mxu1 %v1802_v3  ;;  %p2071_p8 = por %p2070_p4, %p2069_p0 }
  0xc2   : > { %1599 = vmatprep.subr.bf16.mxu1 %v2171_v0  ;;  %1601 = vmatprep.mubr.msk.bf16.mxu1 %vm2172_vm0, %v2171_v0  ;;  %p2065_p7 = pneg %p2064_p12 }
  0xc4   : > { %1592 = vmatpush3.bf16.msra.mxu0 %v1799_v2  ;;  %p2072_p6 = pnand %p2071_p8, %p2065_p7 }
  0xc5   : > { %1605 = vmatprep.subr.bf16.mxu0 %v2171_v0  ;;  %1600 = vmatpush3.bf16.msra.mxu1 %v1803_v5 }
  0xc6   : > { %1613 = vmatprep.subr.bf16.mxu1 %v2171_v0 }
  0xc7   : > { %1594 = vmatmul.mubr.msk.bf16.vlgmr.msra.gmra.mxu0 %vm616_vm1, %v597_v6 }
  0xc8   : > { %1606 = vmatpush3.bf16.msra.mxu0 %v2462_v7  ;;  %1609 = vmatprep.mubr.msk.bf16.mxu0 %vm2172_vm0, %v2171_v0 }
  0xc9   : > { %1607 = vmatprep.subr.bf16.mxu0 %v2171_v0  ;;  %1602 = vmatmul.mubr.msk.bf16.vlgmr.msra.gmra.mxu1 %vm616_vm1, %v597_v6 }
  0xca   : > { %1615 = vmatprep.mubr.msk.bf16.mxu1 %vm2172_vm0, %v2171_v0 }
  0xcc   : > { %1608 = vmatpush3.bf16.msra.mxu0 %v2471_v8 }
  0xcd   : > { %1619 = vmatprep.subr.bf16.mxu0 %v2171_v0 }
  0xcf   : > { %1610 = vmatmul.mubr.msk.bf16.vlgmr.msra.gmra.mxu0 %vm616_vm1, %v813_v10 }
  0xd0   : > { %1621 = vmatprep.mubr.msk.bf16.mxu0 %vm2172_vm0, %v2171_v0 }
 0x17f   : > { %v654_v12 = vpop.f32.mrf.mxu0  ;;  %v715_v18 = vpop.f32.mrf.mxu1 }
 0x180   : > { %v655_v13 = vadd.f32 %v1513_v11, %v654_v12  ;;  %v716_v20 = vadd.f32 %v1517_v16, %v715_v18 }
 0x181   : > { %v1579_v14 = vpop.f32.mrf.mxu0  ;;  %v1587_v21 = vpop.f32.mrf.mxu1 }
 0x182   : > { %v660_v15 = vpack.c.bf16 %v655_v13, %v655_v13  ;;  %v721_v23 = vpack.c.bf16 %v716_v20, %v716_v20 }
 0x183   : > { %v657_v17 = vpop.f32.mrf.mxu0  ;;  %v718_v25 = vpop.f32.mrf.mxu1 }
 0x184   : > { %662 = vst.msk [vmem:[#allocation2] sm:$0xf] %vm661_vm2, %v660_v15  ;;  %722 = vst.msk [vmem:[#allocation3] sm:$0xf] %vm661_vm2, %v721_v23 }
 0x185   : > { %v1580_v19 = vpop.f32.mrf.mxu0  ;;  %v1588_v28 = vpop.f32.mrf.mxu1 }
 0x187   : > { %v760_v22 = vpop.f32.mrf.mxu0 }
 0x188   : > { %v761_v24 = vadd.f32 %v1513_v11, %v760_v22 }
 0x189   : > { %v1595_v26 = vpop.f32.mrf.mxu0  ;;  %v802_v32 = vpop.f32.mrf.mxu1 }
 0x18a   : > { %v766_v27 = vpack.c.bf16 %v761_v24, %v761_v24  ;;  %v803_v35 = vadd.f32 %v1517_v16, %v802_v32 }
 0x18b   : > { %v763_v29 = vpop.f32.mrf.mxu0  ;;  %v811_v30 = vld [vmem:[#allocation2] sm:$0xf]  ;;  %v1603_v36 = vpop.f32.mrf.mxu1  ;;  %v812_v41 = vld [vmem:[#allocation3] sm:$0xf] }
 0x18c   : > { %767 = vst.msk [vmem:[#allocation4] sm:$0xf] %vm661_vm2, %v766_v27  ;;  %v882_v31 = vsel %vm616_vm1, %v811_v30, 0  ;;  %v808_v38 = vpack.c.bf16 %v803_v35, %v803_v35  ;;  %v942_v43 = vsel %vm940_vm3, %v812_v41, 0 }
 0x18d   : > { %v1596_v33 = vpop.f32.mrf.mxu0  ;;  %1614 = vmatpush3.bf16.xpose.msra.mxu1 %v882_v31  ;;  %v805_v40 = vpop.f32.mrf.mxu1  ;;  %1620 = vmatpush3.bf16.msra.mxu0 %v942_v43 }
 0x18e   : > { %1625 = vmatprep.subr.bf16.mxu1 %v2171_v0  ;;  %809 = vst.msk [vmem:[#allocation5] sm:$0xf] %vm661_vm2, %v808_v38  ;;  %1633 = vmatprep.subr.bf16.mxu0 %v2171_v0 }
 0x18f   : > { %v870_v37 = vpop.f32.mrf.mxu0  ;;  %v1604_v45 = vpop.f32.mrf.mxu1 }
 0x190   : > { %v871_v39 = vadd.f32 %v2494_v34, %v870_v37 }
 0x191   : > { %v1611_v42 = vpop.f32.mrf.mxu0 }
 0x192   : > { %v876_v44 = vmul.f32 0.17677669, %v871_v39 }
 0x193   : > { %v873_v46 = vpop.f32.mrf.mxu0  ;;  %v1070_v3 = vld [vmem:[#allocation4] sm:$0xf] }
 0x194   : > { %v877_v47 = vpack.c.bf16 %v876_v44, %v876_v44  ;;  %v1122_v6 = vsel %vm616_vm1, %v1070_v3, 0 }
 0x195   : > { %v1612_v48 = vpop.f32.mrf.mxu0  ;;  %v1071_v37 = vld [vmem:[#allocation5] sm:$0xf] }
 0x196   : > { %1616 = vmatmul.mubr.msk.bf16.vlgmr.msra.gmra.mxu1 %vm616_vm1, %v877_v47  ;;  %v1180_v39 = vsel %vm940_vm3, %v1071_v37, 0 }
 0x197   : > { %1629 = vmatprep.mubr.msk.bf16.mxu1 %vm2172_vm0, %v2171_v0  ;;  %1626 = vmatpush3.bf16.msra.mxu1 %v2509_v59 }
 0x198   : > { %1627 = vmatprep.subr.bf16.mxu1 %v2171_v0 }
 0x19b   : > { %1628 = vmatpush3.bf16.msra.mxu1 %v2515_v60 }
 0x19c   : > { %1641 = vmatprep.subr.bf16.mxu1 %v2171_v0 }
 0x256   : > { %v918_v49 = vpop.f32.mrf.mxu1 }
 0x257   : > { %v925_v50 = vsel %vm924_vm4, %v918_v49, -inf }
 0x258   : > { %926 = vmax.xlane.f32.xlu0 %v925_v50  ;;  %v1617_v51 = vpop.f32.mrf.mxu1 }
 0x25a   : > { %v921_v52 = vpop.f32.mrf.mxu1 }
 0x25c   : > { %v1618_v53 = vpop.f32.mrf.mxu1 }
 0x2e1   : > { %v927_v54 = vpop.xlane.xlu0 %926 }
 0x2e2   : > { %v928_v55 = vsub.f32 %v918_v49, %v927_v54 }
 0x2e4   : > { %v929_v56 = vmul.f32 1.442695, %v928_v55 }
 0x2e6   : > { %1806 = vpow2.f32 %v929_v56 }
 0x2f3   : > { %v1807_v57 = vpop.eup %1806 }
 0x2f4   : > { %v931_v58 = vsel %vm924_vm4, %v1807_v57, 0.0 }
 0x2f5   : > { %932 = vadd.xlane.f32.xlu0 %v931_v58 }
 0x37e   : > { %v933_v61 = vpop.xlane.xlu0 %932 }
 0x37f   : > { %1808 = vrcp.f32 %v933_v61 }
 0x38c   : > { %v1809_v62 = vpop.eup %1808 }
 0x38d   : > { %v935_v63 = vmul.f32 %v1809_v62, %v1807_v57 }
 0x38f   : > { %v936_v1 = vpack.c.bf16 %v935_v63, %v935_v63 }
 0x391   : > { %1622 = vmatmul.mubr.msk.bf16.vlgmr.msra.gmra.mxu0 %vm924_vm4, %v936_v1 }
 0x392   : > { %1634 = vmatpush3.bf16.msra.mxu0 %v2462_v7  ;;  %1637 = vmatprep.mubr.msk.bf16.mxu0 %vm2172_vm0, %v2171_v0 }
 0x393   : > { %1635 = vmatprep.subr.bf16.mxu0 %v2171_v0 }
 0x396   : > { %1636 = vmatpush3.bf16.msra.mxu0 %v2471_v8  ;;  %v2535_v8 = vld [vmem:[%s2617_s10] ss:$0 sm:$0xff] }
 0x397   : > { %1647 = vmatprep.subr.bf16.mxu0 %v2171_v0 }
 0x451   : > { %v978_v2 = vpop.f32.mrf.mxu0 }
 0x452   : > { %v984_v4 = vpack.c.bf16 %v978_v2, %v978_v2 }
 0x453   : > { %v1623_v5 = vpop.f32.mrf.mxu0 }
 0x454   : > { %1630 = vmatmul.mubr.msk.bf16.vlgmr.msra.gmra.mxu1 %vm616_vm1, %v984_v4 }
 0x455   : > { %1642 = vmatpush3.bf16.xpose.msra.mxu1 %v1122_v6  ;;  %v981_v10 = vpop.f32.mrf.mxu0  ;;  %1643 = vmatprep.mubr.msk.bf16.mxu1 %vm2172_vm0, %v2171_v0 }
 0x456   : > { %1653 = vmatprep.subr.bf16.mxu1 %v2171_v0 }
 0x457   : > { %v1624_v7 = vpop.f32.mrf.mxu0 }
 0x514   : > { %v1040_v11 = vpop.f32.mrf.mxu1 }
 0x515   : > { %v1041_v12 = vadd.f32 %v2535_v8, %v1040_v11 }
 0x516   : > { %v1631_v13 = vpop.f32.mrf.mxu1 }
 0x517   : > { %v1046_v14 = vsel %vm616_vm1, %v1041_v12, 0.0  ;;  %v1049_v15 = vmul.f32 %v1041_v12, %v1041_v12 }
 0x518   : > { %1047 = vadd.xlane.f32.xlu1 %v1046_v14  ;;  %v1043_v16 = vpop.f32.mrf.mxu1 }
 0x519   : > { %v1050_v18 = vsel %vm616_vm1, %v1049_v15, 0.0 }
 0x51a   : > { %v1632_v17 = vpop.f32.mrf.mxu1 }
 0x51c   : > { %1051 = vadd.xlane.f32.xlu1 %v1050_v18 }
 0x5a1   : > { %v1048_v19 = vpop.xlane.xlu1 %1047 }
 0x5a2   : > { %v1053_v20 = vmul.f32 0.03125, %v1048_v19 }
 0x5a4   : > { %v1054_v21 = vmul.f32 %v1053_v20, %v1048_v19  ;;  %v1065_v32 = vsub.f32 %v1041_v12, %v1053_v20 }
 0x5a5   : > { %v1052_v22 = vpop.xlane.xlu1 %1051 }
 0x5a6   : > { %v1055_v23 = vsub.f32 %v1052_v22, %v1054_v21 }
 0x5a8   : > { %v1056_v24 = vmax.f32 %v1055_v23, 0.0 }
 0x5aa   : > { %v1057_v25 = vmul.f32 0.032258064, %v1056_v24 }
 0x5ac   : > { %1810 = vrsqrt.f32 %v1057_v25  ;;  %vm1060_vm5 = vcmp.eq.f32.partialorder %v1057_v25, inf  ;;  %v1063_v28 = vand.u32 2147483648, %v1057_v25  ;;  %vm1062_vm6 = vcmp.eq.f32.partialorder %v1057_v25, 0.0 }
 0x5b9   : > { %v1811_v26 = vpop.eup %1810 }
 0x5ba   : > { %v1059_v27 = vmul.f32 %v1811_v26, %v1057_v25 }
 0x5bc   : > { %v1061_v29 = vsel %vm1060_vm5, %v1057_v25, %v1059_v27 }
 0x5bd   : > { %v1064_v30 = vsel %vm1062_vm6, %v1063_v28, %v1061_v29 }
 0x5be   : > { %v1066_v31 = vadd.f32 1e-06, %v1064_v30 }
 0x5c0   : > { %1812 = vrcp.f32 %v1066_v31 }
 0x5cd   : > { %v1813_v33 = vpop.eup %1812 }
 0x5ce   : > { %v1068_v35 = vmul.f32 %v1813_v33, %v1065_v32 }
 0x5d0   : > { %v2541_v36 = vadd.f32 %v1068_v35, %v2476_v9 }
 0x5d2   : > { %v1072_v38 = vpack.c.bf16 %v2541_v36, %v2541_v36 }
 0x5d4   : > { %1638 = vmatmul.mubr.msk.bf16.vlgmr.msra.gmra.mxu0 %vm616_vm1, %v1072_v38 }
 0x5d5   : > { %1648 = vmatpush3.bf16.msra.mxu0 %v1180_v39  ;;  %1649 = vmatprep.mubr.msk.bf16.mxu0 %vm2172_vm0, %v2171_v0 }
 0x694   : > { %v1110_v40 = vpop.f32.mrf.mxu0 }
 0x695   : > { %v1111_v41 = vadd.f32 %v2494_v34, %v1110_v40 }
 0x696   : > { %v1639_v42 = vpop.f32.mrf.mxu0 }
 0x697   : > { %v1116_v43 = vmul.f32 0.17677669, %v1111_v41 }
 0x698   : > { %v1113_v44 = vpop.f32.mrf.mxu0 }
 0x699   : > { %v1117_v9 = vpack.c.bf16 %v1116_v43, %v1116_v43 }
 0x69a   : > { %v1640_v45 = vpop.f32.mrf.mxu0 }
 0x69b   : > { %1644 = vmatmul.mubr.msk.bf16.vlgmr.msra.gmra.mxu1 %vm616_vm1, %v1117_v9 }
 0x69c   : > { %1654 = vmatpush3.bf16.msra.mxu1 %v2509_v59  ;;  %1657 = vmatprep.mubr.msk.bf16.mxu1 %vm2172_vm0, %v2171_v0 }
 0x69d   : > { %1655 = vmatprep.subr.bf16.mxu1 %v2171_v0 }
 0x6a0   : > { %1656 = vmatpush3.bf16.msra.mxu1 %v2515_v60 }
 0x75b   : > { %v1158_v46 = vpop.f32.mrf.mxu1 }
 0x75c   : > { %v1164_v47 = vsel %vm924_vm4, %v1158_v46, -inf }
 0x75d   : > { %1165 = vmax.xlane.f32.xlu0 %v1164_v47  ;;  %v1645_v34 = vpop.f32.mrf.mxu1 }
 0x75f   : > { %v1161_v48 = vpop.f32.mrf.mxu1 }
 0x761   : > { %v1646_v49 = vpop.f32.mrf.mxu1 }
 0x7e6   : > { %v1166_v50 = vpop.xlane.xlu0 %1165 }
 0x7e7   : > { %v1167_v51 = vsub.f32 %v1158_v46, %v1166_v50 }
 0x7e9   : > { %v1168_v52 = vmul.f32 1.442695, %v1167_v51 }
 0x7eb   : > { %1814 = vpow2.f32 %v1168_v52 }
 0x7f8   : > { %v1815_v53 = vpop.eup %1814 }
 0x7f9   : > { %v1170_v54 = vsel %vm924_vm4, %v1815_v53, 0.0 }
 0x7fa   : > { %1171 = vadd.xlane.f32.xlu1 %v1170_v54 }
 0x883   : > { %v1172_v55 = vpop.xlane.xlu1 %1171 }
 0x884   : > { %1816 = vrcp.f32 %v1172_v55 }
 0x891   : > { %v1817_v0 = vpop.eup %1816 }
 0x892   : > { %v1174_v56 = vmul.f32 %v1817_v0, %v1815_v53 }
 0x894   : > { %v1175_v57 = vpack.c.bf16 %v1174_v56, %v1174_v56 }
 0x896   : > { %1650 = vmatmul.mubr.msk.bf16.vlgmr.msra.gmra.mxu0 %vm924_vm4, %v1175_v57 }
 0x956   : > { %v1216_v58 = vpop.f32.mrf.mxu0 }
 0x957   : > { %v1222_v59 = vpack.c.bf16 %v1216_v58, %v1216_v58 }
 0x958   : > { %v1651_v60 = vpop.f32.mrf.mxu0 }
 0x959   : > { %1658 = vmatmul.mubr.msk.bf16.vlgmr.msra.gmra.mxu1 %vm616_vm1, %v1222_v59 }
 0x95a   : > { %v1219_v61 = vpop.f32.mrf.mxu0 }
 0x95c   : > { %v1652_v62 = vpop.f32.mrf.mxu0 }
 0xa19   : > { %v1260_v63 = vpop.f32.mrf.mxu1 }
 0xa1a   : > { %v1261_v1 = vadd.f32 %v2535_v8, %v1260_v63 }
 0xa1b   : > { %v1659_v2 = vpop.f32.mrf.mxu1 }
 0xa1c   : > { %v1266_v3 = vsel %vm616_vm1, %v1261_v1, 0.0  ;;  %v1269_v4 = vmul.f32 %v1261_v1, %v1261_v1 }
 0xa1d   : > { %1267 = vadd.xlane.f32.xlu0 %v1266_v3  ;;  %v1263_v5 = vpop.f32.mrf.mxu1 }
 0xa1e   : > { %v1270_v6 = vsel %vm616_vm1, %v1269_v4, 0.0 }
 0xa1f   : > { %1271 = vadd.xlane.f32.xlu1 %v1270_v6  ;;  %v1660_v10 = vpop.f32.mrf.mxu1 }
 0xaa6   : > { %v1268_v7 = vpop.xlane.xlu0 %1267 }
 0xaa7   : > { %v1273_v11 = vmul.f32 0.03125, %v1268_v7 }
 0xaa8   : > { %v1272_v13 = vpop.xlane.xlu1 %1271 }
 0xaa9   : > { %v1274_v12 = vmul.f32 %v1273_v11, %v1268_v7  ;;  %v1285_v22 = vsub.f32 %v1261_v1, %v1273_v11 }
 0xaab   : > { %v1275_v14 = vsub.f32 %v1272_v13, %v1274_v12 }
 0xaad   : > { %v1276_v15 = vmax.f32 %v1275_v14, 0.0 }
 0xaaf   : > { %v1277_v16 = vmul.f32 0.032258064, %v1276_v15 }
 0xab1   : > { %1818 = vrsqrt.f32 %v1277_v16  ;;  %vm1280_vm7 = vcmp.eq.f32.partialorder %v1277_v16, inf  ;;  %v1283_v18 = vand.u32 2147483648, %v1277_v16  ;;  %vm1282_vm8 = vcmp.eq.f32.partialorder %v1277_v16, 0.0 }
 0xabe   : > { %v1819_v8 = vpop.eup %1818 }
 0xabf   : > { %v1279_v17 = vmul.f32 %v1819_v8, %v1277_v16 }
 0xac1   : > { %v1281_v19 = vsel %vm1280_vm7, %v1277_v16, %v1279_v17 }
 0xac2   : > { %v1284_v20 = vsel %vm1282_vm8, %v1283_v18, %v1281_v19 }
 0xac3   : > { %v1286_v21 = vadd.f32 1e-06, %v1284_v20 }
 0xac5   : > { %1820 = vrcp.f32 %v1286_v21 }
 0xad2   : > { %v1821_v23 = vpop.eup %1820 }
 0xad3   : > { %v1288_v24 = vmul.f32 %v1821_v23, %v1285_v22 }
 0xad5   : > { %v1289_v25 = vadd.f32 %v1288_v24, %v2541_v36 }
 0xad7   : > { %1290 = vst.msk [vmem:[%s570_s15] sm:$0xff] %vm616_vm1, %v1289_v25 }
 0xad8   : > { %2075 = shalt.err (!%p2072_p6)
}
 0xad9   : > { %s2076_s11 = scalar_lea.hbm %s1304_s1, 128  ;;  %s2080_s23 = scalar_lea.hbm %s2673_s29, 256 }
 0xada   : > { %p2077_p13 = scmp.ne.s32.totalorder %s1304_s1, %s2076_s11  ;;  %p2081_p3 = scmp.lt.s32.totalorder %s1304_s1, %s2673_s29 }
 0xadb   : > { %p2082_p11 = scmp.lt.s32.totalorder %s2080_s23, %s2076_s11 }
 0xadc   : > { %p2078_p9 = pnand %p2077_p13, %p2674_p5 }
 0xadd   : > { %p2083_p10 = por %p2082_p11, %p2081_p3 }
 0xade   : > { %p2079_p1 = pneg %p2078_p9 }
 0xae0   : > { %p2084_p2 = pnand %p2083_p10, %p2079_p1 }
 0xae2   : > { %2087 = shalt.err (!%p2084_p2)
}
 0xae3   : > { %1691 = dma.vmem_to_hbm [thread:$0]  (%p2674_p5), %s1307_s16, 128, %s1304_s1, %s1292_s19  }
 0xae4 PF: > { %s2675_s25 = sld [smem:[#allocation28_spill]] }
 0xae5   : > { %s2676_s3 = sld [smem:[#allocation34_spill]] }
 0xae6   : > { %s2677_s30 = sld [smem:[#allocation30_spill]] }
 0xaea   : > { %s1318_s5 = sand.u32 1, %s2675_s25  }
 0xaeb   : > { %p2678_p12 = scmp.ne.s32.totalorder %s2676_s3, 0  ;;  %s1319_s15 = scalar_lea.sflag [#allocation8], %s1318_s5 }
 0xaec   : > { %p2679_p7 = scmp.ge.s32.totalorder %s2677_s30, 2 }
 0xaee   : > { %p1723_p0 = pnand %p2679_p7, %p2678_p12 }
 0xaf0   : > { %p1724_p4 = pneg %p1723_p0 }
 0xaf2   : > { %2133 = dma.done.wait (%p1724_p4), %s1319_s15, 128  }
 0xaf3   : > { %2135 = vsyncadd (%p1724_p4), %s1319_s15, 4294967168  ;;  %s33_s22 = sadd.s32 1, %s2677_s30   ;;  %s2680_s12 = sld [smem:[#allocation29_spill]] }
 0xaf4   : > { %p30_p8 = scmp.ge.s32.totalorder %s33_s22, 4   ;;  %s2681_s19 = sld [smem:[#allocation33_spill]] }
 0xaf5   : > { %s2682_s16 = sld [smem:[#allocation31_spill]]  ;;  %s2683_s17 = smov %s2142_s18 }
 0xaf6   : > { %s2685_s20 = smov %s2154_s21 }
 0xaf7   :  { %32 = sbr.rel (!%p30_p8) target bundleno = 17 (0x11), region = 161 }
 0xaf9   : > { %s2684_s18 = smov %s2680_s12 }
 0xafb   : > { %s2686_s21 = smov %s2682_s16 }
 0xafc   :  { %1324 = vsyncpa [#allocation7], 1 }
 0xafd   :  { %1326 = vsyncpa [#allocation7 + $0x1], 1 }
 0xafe   :  { %1327 = vsyncpa [#allocation10], 1 }
 0xaff   :  { %1329 = vsyncpa [#allocation10 + $0x1], 1 }
 0xb00   :  { %1330 = vsyncpa [#allocation13], 1 }
 0xb01   :  { %1331 = vsyncpa [#allocation16], 1 }
 0xb02   :  { %1332 = vsyncpa [#allocation19], 1 }
 0xb03   :  { %1333 = vsyncpa [#allocation8], 1 }
 0xb04   :  { %1335 = vsyncpa [#allocation8 + $0x1], 1 }

</bundles_post_ra>
